<compile_context>
chip_gen: v7x
topology: tpu7x:2x2x1
jax: 0.10.0
libtpu: 0.0.40
codegen_flags: <defaults>
</compile_context>

<pallas_src>
import jax
import jax.numpy as jnp
from jax.experimental import pallas as pl
from jax.experimental.pallas import tpu as pltpu

HIDDEN = 256
MASK_FILL = -100000000.0   # exactly the constant used in the PyTorch module
LANES = 128                # lane width for padded action / critic head columns
OUT_COLS = 8               # narrow output slab: col0=logp, col1=value, col>=2 entropy


def _round_up(x, m):
    return ((x + m - 1) // m) * m


def _pick_tb(B):
    """Batch-tile policy.

    Large batches: 512-1024-row tiles (HBM-roofline / MXU-fill sweet spot, per-step
    overhead amortized) while leaving >= 2 tiles so the "parallel" grid axis can
    feed both v7x TensorCores. Small batches: one tile covering the whole batch.
    Rows are a multiple of 32 so the int8 mask block matches its native (32, 128)
    VMEM tiling.
    """
    if B > 2048:
        return 1024
    if B > 1024:
        return 512
    if B > 512:
        return _round_up((B + 1) // 2, 32)   # exactly two tiles
    return _round_up(B, 32)                  # single tile


def actor_critic_kernel(
    s_ref,                       # (TB, D)          f32   states tile (cast to bf16 in-kernel)
    w1_ref, b1_ref,              # (D, 512) bf16, (1, 512) f32   fused actor||critic layer 1
    aw2_ref, ab2_ref,            # (256, 256) bf16, (1, 256) f32
    aw3_ref, ab3_ref,            # (256, A_pad) bf16, (1, A_pad) f32
    cw2_ref, cb2_ref,            # (256, 256) bf16, (1, 256) f32
    cw3_ref, cb3_ref,            # (256, 128) bf16 (col 0 real), (1, 128) f32
    act_ref,                     # (TB, 1) int32    taken actions
    mask_ref,                    # (TB, A_pad) int8 (0 = illegal action / padding)
    out_ref,                     # (TB, 8)  f32: col0=logp, col1=value, col>=2 entropy
):
    # Cast at point of use: states come straight from HBM as f32 (4 B/elem read)
    # instead of a separate XLA cast+pad pass (4B read + 2B write + 2B re-read).
    x = s_ref[...].astype(jnp.bfloat16)                          # (TB, D) bf16

    # ---- fused first layer: actor and critic share the flattened state ----
    h1 = jnp.dot(x, w1_ref[...], preferred_element_type=jnp.float32) + b1_ref[...]
    h1 = jnp.maximum(h1, 0.0)                                    # (TB, 512) f32
    ha = h1[:, :HIDDEN].astype(jnp.bfloat16)                     # actor hidden
    hc = h1[:, HIDDEN:].astype(jnp.bfloat16)                     # critic hidden

    # ---- actor head: 256 -> 256 -> A_pad ----
    ha = jnp.maximum(
        jnp.dot(ha, aw2_ref[...], preferred_element_type=jnp.float32) + ab2_ref[...],
        0.0)
    logits = jnp.dot(ha.astype(jnp.bfloat16), aw3_ref[...],
                     preferred_element_type=jnp.float32) + ab3_ref[...]   # (TB, A_pad) f32

    # ---- critic head: 256 -> 256 -> 1 (padded to 128 output lanes) ----
    hc = jnp.maximum(
        jnp.dot(hc, cw2_ref[...], preferred_element_type=jnp.float32) + cb2_ref[...],
        0.0)
    value = (jnp.dot(hc.astype(jnp.bfloat16), cw3_ref[...],
                     preferred_element_type=jnp.float32) + cb3_ref[...])[:, 0:1]  # (TB, 1)

    # ---- action masking: illegal / padded action lanes -> finite MASK_FILL ----
    # MASK_FILL must stay finite: exp(MASK_FILL - m) == 0 and 0 * MASK_FILL == 0,
    # so masked lanes are exactly inert in the softmax / entropy sums below.
    mask = mask_ref[...].astype(jnp.float32)
    logits = jnp.where(mask != 0.0, logits, jnp.float32(MASK_FILL))

    # ---- numerically stable softmax stats (all f32) ----
    m = jnp.max(logits, axis=1, keepdims=True)                   # (TB, 1)
    e = jnp.exp(logits - m)                                      # (TB, A_pad)
    z = jnp.sum(e, axis=1, keepdims=True)                        # (TB, 1)
    inv_z = pl.reciprocal(z, approx=True)                        # EUP slot; entropy-only (~1e-3 rel)
    lse = m + jnp.log(z)                                         # logsumexp (exact log for logp)

    # log_prob(action) via one-hot select. Assumes taken actions are legal under
    # the mask (standard PPO rollout invariant); otherwise logp ~= MASK_FILL.
    col = jax.lax.broadcasted_iota(jnp.int32, logits.shape, 1)
    onehot = (col == act_ref[...]).astype(jnp.float32)
    sel_logit = jnp.sum(logits * onehot, axis=1, keepdims=True)
    logp = sel_logit - lse

    # entropy = lse - sum(p * logits); masked lanes: e == 0 exactly => contribute 0
    ent = lse - jnp.sum(e * logits, axis=1, keepdims=True) * inv_z

    # ---- narrow (TB, 8) store: 16x fewer HBM write bytes than a 128-lane slab ----
    ocol = jax.lax.broadcasted_iota(jnp.int32, out_ref.shape, 1)
    out_ref[...] = jnp.where(ocol == 0, logp, jnp.where(ocol == 1, value, ent))


def init_params(key, state_dim, action_dim):
    """Deterministic init mimicking PyTorch nn.Linear default (uniform(-1/sqrt(fan_in), ..))."""
    def linear(key, fan_in, fan_out):
        kw, kb = jax.random.split(key)
        bound = 1.0 / jnp.sqrt(jnp.float32(fan_in))
        w = jax.random.uniform(kw, (fan_in, fan_out), jnp.float32, -bound, bound)
        b = jax.random.uniform(kb, (1, fan_out), jnp.float32, -bound, bound)
        return w, b

    keys = jax.random.split(key, 6)
    p = {}
    p["aw1"], p["ab1"] = linear(keys[0], state_dim, HIDDEN)
    p["aw2"], p["ab2"] = linear(keys[1], HIDDEN, HIDDEN)
    p["aw3"], p["ab3"] = linear(keys[2], HIDDEN, action_dim)
    p["cw1"], p["cb1"] = linear(keys[3], state_dim, HIDDEN)
    p["cw2"], p["cb2"] = linear(keys[4], HIDDEN, HIDDEN)
    p["cw3"], p["cb3"] = linear(keys[5], HIDDEN, 1)
    return p


def pack_params(params):
    """One-time (per PPO update) weight packing for the kernel.

    Fuses the actor/critic first layers (shared input), pads the output layers to
    128 lanes, and casts weights to bf16 (biases stay f32). Hoisted out of the
    per-minibatch evaluate() so no XLA concat/pad/cast prologue runs per call.
    """
    A = params["aw3"].shape[1]
    A_pad = max(LANES, _round_up(A, LANES))
    return {
        "w1":  jnp.concatenate([params["aw1"], params["cw1"]], axis=1).astype(jnp.bfloat16),
        "b1":  jnp.concatenate([params["ab1"], params["cb1"]], axis=1).astype(jnp.float32),
        "aw2": params["aw2"].astype(jnp.bfloat16),
        "ab2": params["ab2"].astype(jnp.float32),
        "aw3": jnp.pad(params["aw3"], ((0, 0), (0, A_pad - A))).astype(jnp.bfloat16),
        "ab3": jnp.pad(params["ab3"], ((0, 0), (0, A_pad - A))).astype(jnp.float32),
        "cw2": params["cw2"].astype(jnp.bfloat16),
        "cb2": params["cb2"].astype(jnp.float32),
        "cw3": jnp.pad(params["cw3"], ((0, 0), (0, LANES - 1))).astype(jnp.bfloat16),
        "cb3": jnp.pad(params["cb3"], ((0, 0), (0, LANES - 1))).astype(jnp.float32),
    }


@jax.jit
def evaluate(packed, states, actions, action_masks):
    """Pallas implementation of ActorCritic.evaluate.

    packed:       output of pack_params(params)  (pre-packed bf16 weights)
    states:       (B, C, H, W) float32   (NCHW, flattened row-major inside)
    actions:      (B,)          int32
    action_masks: (B, A)        bool/int
    returns (action_logprobs (B,), state_values (B, 1), dist_entropy (B,))
    """
    B = states.shape[0]
    D = states.shape[1] * states.shape[2] * states.shape[3]
    A = action_masks.shape[1]
    A_pad = packed["aw3"].shape[1]

    TB = _pick_tb(B)
    n_tiles = pl.cdiv(B, TB)

    # Inputs go in as-is: f32 states (reshape of contiguous NCHW is free), int8 mask
    # (4x less DMA than int32), int32 actions. No batch padding — Pallas clips the
    # partial last tile; garbage rows only affect their own (dropped) outputs and
    # out-of-bounds output writes are discarded.
    sf = states.reshape(B, D)
    act2d = actions.astype(jnp.int32).reshape(B, 1)
    mask2d = jnp.pad(action_masks.astype(jnp.int8), ((0, 0), (0, A_pad - A)))

    tile_map = lambda i: (i, 0)     # batch-tiled arrays
    const_map = lambda i: (0, 0)    # weights/biases stay resident across tiles

    in_specs = [
        pl.BlockSpec((TB, D), tile_map),            # states
        pl.BlockSpec(packed["w1"].shape, const_map),
        pl.BlockSpec(packed["b1"].shape, const_map),
        pl.BlockSpec(packed["aw2"].shape, const_map),
        pl.BlockSpec(packed["ab2"].shape, const_map),
        pl.BlockSpec(packed["aw3"].shape, const_map),
        pl.BlockSpec(packed["ab3"].shape, const_map),
        pl.BlockSpec(packed["cw2"].shape, const_map),
        pl.BlockSpec(packed["cb2"].shape, const_map),
        pl.BlockSpec(packed["cw3"].shape, const_map),
        pl.BlockSpec(packed["cb3"].shape, const_map),
        pl.BlockSpec((TB, 1), tile_map),            # actions
        pl.BlockSpec((TB, A_pad), tile_map),        # mask (int8)
    ]
    out_spec = pl.BlockSpec((TB, OUT_COLS), tile_map)
    out_shape = jax.ShapeDtypeStruct((B, OUT_COLS), jnp.float32)

    # Per-TC VMEM budget: double-buffered batch-tiled blocks (narrow actions/output
    # blocks pad to 128 lanes in VMEM) + the resident weights. Weights have constant
    # index maps (fetched once); their default double-buffer is ~1.5 MiB extra,
    # comfortably inside even v7x's 64 MiB/TC, so pl.Buffered(1) is not needed.
    weight_bytes = sum(int(packed[k].size) * 2 for k in ("w1", "aw2", "aw3", "cw2", "cw3"))
    weight_bytes += sum(8 * int(packed[k].shape[1]) * 4
                        for k in ("b1", "ab2", "ab3", "cb2", "cb3"))
    blk_bytes = TB * D * 4 + TB * A_pad + 2 * (TB * LANES * 4)
    vmem_limit = int(min(max(2 * (blk_bytes + weight_bytes) + (8 << 20), 32 << 20), 56 << 20))

    out = pl.pallas_call(
        actor_critic_kernel,
        grid=(n_tiles,),
        in_specs=in_specs,
        out_specs=out_spec,
        out_shape=out_shape,
        compiler_params=pltpu.CompilerParams(
            dimension_semantics=("parallel",),   # batch tiles shard across TCs on v7x
            vmem_limit_bytes=vmem_limit,
        ),
    )(sf, packed["w1"], packed["b1"], packed["aw2"], packed["ab2"],
      packed["aw3"], packed["ab3"], packed["cw2"], packed["cb2"],
      packed["cw3"], packed["cb3"], act2d, mask2d)

    return out[:, 0], out[:, 1:2], out[:, 2]


# ----------------------------- references -----------------------------------

def _mlp_bf16(x, w1, b1, w2, b2, w3, b3):
    """Same math as the kernel: bf16 matmul operands, f32 accumulation, f32 bias/ReLU."""
    def dot(a, w):
        return jnp.dot(a.astype(jnp.bfloat16), w.astype(jnp.bfloat16),
                       preferred_element_type=jnp.float32)
    h = jnp.maximum(dot(x, w1) + b1, 0.0)
    h = jnp.maximum(dot(h, w2) + b2, 0.0)
    return dot(h, w3) + b3


def evaluate_ref(params, states, actions, action_masks):
    """Pure-JAX reference mirroring the kernel's bf16-weight math."""
    B = states.shape[0]
    sf = states.reshape(B, -1).astype(jnp.float32)
    logits = _mlp_bf16(sf, params["aw1"], params["ab1"], params["aw2"], params["ab2"],
                       params["aw3"], params["ab3"])
    logits = jnp.where(action_masks, logits, MASK_FILL)
    m = jnp.max(logits, axis=1, keepdims=True)
    e = jnp.exp(logits - m)
    z = jnp.sum(e, axis=1, keepdims=True)
    lse = m + jnp.log(z)
    logp = jnp.take_along_axis(logits, actions.reshape(B, 1).astype(jnp.int32), axis=1) - lse
    ent = lse - jnp.sum(e * logits, axis=1, keepdims=True) / z
    values = _mlp_bf16(sf, params["cw1"], params["cb1"], params["cw2"], params["cb2"],
                       params["cw3"], params["cb3"])
    return logp[:, 0], values, ent[:, 0]


def evaluate_ref_f32(params, states, actions, action_masks):
    """Torch-faithful full-f32 reference (sanity check that bf16 weights are benign)."""
    B = states.shape[0]
    sf = states.reshape(B, -1).astype(jnp.float32)
    h = jnp.maximum(sf @ params["aw1"] + params["ab1"], 0.0)
    h = jnp.maximum(h @ params["aw2"] + params["ab2"], 0.0)
    logits = h @ params["aw3"] + params["ab3"]
    logits = jnp.where(action_masks, logits, MASK_FILL)
    lse = jax.scipy.special.logsumexp(logits, axis=1, keepdims=True)
    logp = jnp.take_along_axis(logits, actions.reshape(B, 1), axis=1) - lse
    p = jax.nn.softmax(logits, axis=1)
    ent = (lse - jnp.sum(p * logits, axis=1, keepdims=True))[:, 0]
    hc = jnp.maximum(sf @ params["cw1"] + params["cb1"], 0.0)
    hc = jnp.maximum(hc @ params["cw2"] + params["cb2"], 0.0)
    values = hc @ params["cw3"] + params["cb3"]
    return logp[:, 0], values, ent


if __name__ == "__main__":
    # Small shapes consistent with the module: obs_shape=(4,16,16) -> state_dim=1024
    obs_shape = (4, 16, 16)
    action_dim = 8
    batch = 2
    state_dim = obs_shape[0] * obs_shape[1] * obs_shape[2]

    key = jax.random.PRNGKey(0)
    kp, ks, ka, km = jax.random.split(key, 4)

    params = init_params(kp, state_dim, action_dim)
    packed = pack_params(params)           # once per PPO update, not per minibatch
    states = jax.random.normal(ks, (batch,) + obs_shape, jnp.float32)
    actions = jax.random.randint(ka, (batch,), 0, action_dim, jnp.int32)
    masks = jax.random.bernoulli(km, 0.7, (batch, action_dim))
    # make sure taken actions are legal under the mask (as in real PPO rollouts)
    masks = masks.at[jnp.arange(batch), actions].set(True)

    # TODO(synk): act()'s Categorical.sample() is stochastic; only the evaluate() path
    # is implemented here.
    logp, values, entropy = evaluate(packed, states, actions, masks)
    jax.block_until_ready((logp, values, entropy))

    # strict: same bf16-weight math as the kernel
    logp_r, values_r, entropy_r = evaluate_ref(params, states, actions, masks)
    assert jnp.allclose(logp, logp_r, atol=2e-3, rtol=2e-3)
    assert jnp.allclose(values, values_r, atol=2e-3, rtol=2e-3)
    assert jnp.allclose(entropy, entropy_r, atol=1e-2, rtol=1e-2)

    # loose: torch-faithful f32 path (bf16 weights perturb numerics only slightly)
    logp_f, values_f, entropy_f = evaluate_ref_f32(params, states, actions, masks)
    assert jnp.allclose(logp, logp_f, atol=5e-2, rtol=5e-2)
    assert jnp.allclose(values, values_f, atol=5e-2, rtol=5e-2)
    assert jnp.allclose(entropy, entropy_f, atol=5e-2, rtol=5e-2)

    print("KERNEL_OK")
</pallas_src>

<mosaic_0001>
module attributes {stable_mosaic.version = 11 : i64} {
  func.func @actor_critic_kernel(%arg0: i32, %arg1: memref<32x1024xf32, #tpu.memory_space<vmem>>, %arg2: memref<1024x512xbf16, #tpu.memory_space<vmem>>, %arg3: memref<1x512xf32, #tpu.memory_space<vmem>>, %arg4: memref<256x256xbf16, #tpu.memory_space<vmem>>, %arg5: memref<1x256xf32, #tpu.memory_space<vmem>>, %arg6: memref<256x128xbf16, #tpu.memory_space<vmem>>, %arg7: memref<1x128xf32, #tpu.memory_space<vmem>>, %arg8: memref<256x256xbf16, #tpu.memory_space<vmem>>, %arg9: memref<1x256xf32, #tpu.memory_space<vmem>>, %arg10: memref<256x128xbf16, #tpu.memory_space<vmem>>, %arg11: memref<1x128xf32, #tpu.memory_space<vmem>>, %arg12: memref<32x1xi32, #tpu.memory_space<vmem>>, %arg13: memref<32x128xi8, #tpu.memory_space<vmem>>, %arg14: memref<32x8xf32, #tpu.memory_space<vmem>>) attributes {dimension_semantics = [#tpu.dimension_semantics<parallel>], iteration_bounds = array<i64: 1>, scalar_prefetch = 0 : i64, scratch_operands = 0 : i64, tpu.core_type = #tpu.core_type<tc>, window_params = [{transform_indices = @transform_0, window_bounds = array<i64: 32, 1024>}, {pipeline_mode = #tpu.pipeline_mode<synchronous>, transform_indices = @transform_1, window_bounds = array<i64: 1024, 512>}, {pipeline_mode = #tpu.pipeline_mode<synchronous>, transform_indices = @transform_2, window_bounds = array<i64: 1, 512>}, {pipeline_mode = #tpu.pipeline_mode<synchronous>, transform_indices = @transform_3, window_bounds = array<i64: 256, 256>}, {pipeline_mode = #tpu.pipeline_mode<synchronous>, transform_indices = @transform_4, window_bounds = array<i64: 1, 256>}, {pipeline_mode = #tpu.pipeline_mode<synchronous>, transform_indices = @transform_5, window_bounds = array<i64: 256, 128>}, {pipeline_mode = #tpu.pipeline_mode<synchronous>, transform_indices = @transform_6, window_bounds = array<i64: 1, 128>}, {pipeline_mode = #tpu.pipeline_mode<synchronous>, transform_indices = @transform_7, window_bounds = array<i64: 256, 256>}, {pipeline_mode = #tpu.pipeline_mode<synchronous>, transform_indices = @transform_8, window_bounds = array<i64: 1, 256>}, {pipeline_mode = #tpu.pipeline_mode<synchronous>, transform_indices = @transform_9, window_bounds = array<i64: 256, 128>}, {pipeline_mode = #tpu.pipeline_mode<synchronous>, transform_indices = @transform_10, window_bounds = array<i64: 1, 128>}, {transform_indices = @transform_11, window_bounds = array<i64: 32, 1>}, {transform_indices = @transform_12, window_bounds = array<i64: 32, 128>}, {transform_indices = @transform_13, window_bounds = array<i64: 32, 8>}]} {
    %c0 = arith.constant 0 : index
    %c0_0 = arith.constant 0 : index
    %0 = vector.load %arg1[%c0, %c0_0] : memref<32x1024xf32, #tpu.memory_space<vmem>>, vector<32x1024xf32>
    %1 = arith.truncf %0 : vector<32x1024xf32> to vector<32x1024xbf16>
    %c0_1 = arith.constant 0 : index
    %c0_2 = arith.constant 0 : index
    %2 = vector.load %arg2[%c0_1, %c0_2] : memref<1024x512xbf16, #tpu.memory_space<vmem>>, vector<1024x512xbf16>
    %cst = arith.constant dense<0.000000e+00> : vector<32x512xf32>
    %3 = tpu.matmul %1, %2, %cst {dimension_numbers = #tpu.dot_dimension_numbers<[1], [0], [0], [1], [0, 0, 1, 1], [], []>} : vector<32x1024xbf16>, vector<1024x512xbf16>, vector<32x512xf32> -> vector<32x512xf32>
    %c0_3 = arith.constant 0 : index
    %c0_4 = arith.constant 0 : index
    %4 = vector.load %arg3[%c0_3, %c0_4] : memref<1x512xf32, #tpu.memory_space<vmem>>, vector<1x512xf32>
    %5 = vector.broadcast %4 : vector<1x512xf32> to vector<32x512xf32>
    %6 = arith.addf %3, %5 : vector<32x512xf32>
    %cst_5 = arith.constant 0.000000e+00 : f32
    %7 = vector.broadcast %cst_5 : f32 to vector<32x512xf32>
    %8 = arith.maximumf %6, %7 : vector<32x512xf32>
    %9 = vector.extract_strided_slice %8 {offsets = [0, 0], sizes = [32, 256], strides = [1, 1]} : vector<32x512xf32> to vector<32x256xf32>
    %10 = arith.truncf %9 : vector<32x256xf32> to vector<32x256xbf16>
    %11 = vector.extract_strided_slice %8 {offsets = [0, 256], sizes = [32, 256], strides = [1, 1]} : vector<32x512xf32> to vector<32x256xf32>
    %12 = arith.truncf %11 : vector<32x256xf32> to vector<32x256xbf16>
    %c0_6 = arith.constant 0 : index
    %c0_7 = arith.constant 0 : index
    %13 = vector.load %arg4[%c0_6, %c0_7] : memref<256x256xbf16, #tpu.memory_space<vmem>>, vector<256x256xbf16>
    %cst_8 = arith.constant dense<0.000000e+00> : vector<32x256xf32>
    %14 = tpu.matmul %10, %13, %cst_8 {dimension_numbers = #tpu.dot_dimension_numbers<[1], [0], [0], [1], [0, 0, 1, 1], [], []>} : vector<32x256xbf16>, vector<256x256xbf16>, vector<32x256xf32> -> vector<32x256xf32>
    %c0_9 = arith.constant 0 : index
    %c0_10 = arith.constant 0 : index
    %15 = vector.load %arg5[%c0_9, %c0_10] : memref<1x256xf32, #tpu.memory_space<vmem>>, vector<1x256xf32>
    %16 = vector.broadcast %15 : vector<1x256xf32> to vector<32x256xf32>
    %17 = arith.addf %14, %16 : vector<32x256xf32>
    %cst_11 = arith.constant 0.000000e+00 : f32
    %18 = vector.broadcast %cst_11 : f32 to vector<32x256xf32>
    %19 = arith.maximumf %17, %18 : vector<32x256xf32>
    %20 = arith.truncf %19 : vector<32x256xf32> to vector<32x256xbf16>
    %c0_12 = arith.constant 0 : index
    %c0_13 = arith.constant 0 : index
    %21 = vector.load %arg6[%c0_12, %c0_13] : memref<256x128xbf16, #tpu.memory_space<vmem>>, vector<256x128xbf16>
    %cst_14 = arith.constant dense<0.000000e+00> : vector<32x128xf32>
    %22 = tpu.matmul %20, %21, %cst_14 {dimension_numbers = #tpu.dot_dimension_numbers<[1], [0], [0], [1], [0, 0, 1, 1], [], []>} : vector<32x256xbf16>, vector<256x128xbf16>, vector<32x128xf32> -> vector<32x128xf32>
    %c0_15 = arith.constant 0 : index
    %c0_16 = arith.constant 0 : index
    %23 = vector.load %arg7[%c0_15, %c0_16] : memref<1x128xf32, #tpu.memory_space<vmem>>, vector<1x128xf32>
    %24 = vector.broadcast %23 : vector<1x128xf32> to vector<32x128xf32>
    %25 = arith.addf %22, %24 : vector<32x128xf32>
    %c0_17 = arith.constant 0 : index
    %c0_18 = arith.constant 0 : index
    %26 = vector.load %arg8[%c0_17, %c0_18] : memref<256x256xbf16, #tpu.memory_space<vmem>>, vector<256x256xbf16>
    %cst_19 = arith.constant dense<0.000000e+00> : vector<32x256xf32>
    %27 = tpu.matmul %12, %26, %cst_19 {dimension_numbers = #tpu.dot_dimension_numbers<[1], [0], [0], [1], [0, 0, 1, 1], [], []>} : vector<32x256xbf16>, vector<256x256xbf16>, vector<32x256xf32> -> vector<32x256xf32>
    %c0_20 = arith.constant 0 : index
    %c0_21 = arith.constant 0 : index
    %28 = vector.load %arg9[%c0_20, %c0_21] : memref<1x256xf32, #tpu.memory_space<vmem>>, vector<1x256xf32>
    %29 = vector.broadcast %28 : vector<1x256xf32> to vector<32x256xf32>
    %30 = arith.addf %27, %29 : vector<32x256xf32>
    %cst_22 = arith.constant 0.000000e+00 : f32
    %31 = vector.broadcast %cst_22 : f32 to vector<32x256xf32>
    %32 = arith.maximumf %30, %31 : vector<32x256xf32>
    %33 = arith.truncf %32 : vector<32x256xf32> to vector<32x256xbf16>
    %c0_23 = arith.constant 0 : index
    %c0_24 = arith.constant 0 : index
    %34 = vector.load %arg10[%c0_23, %c0_24] : memref<256x128xbf16, #tpu.memory_space<vmem>>, vector<256x128xbf16>
    %cst_25 = arith.constant dense<0.000000e+00> : vector<32x128xf32>
    %35 = tpu.matmul %33, %34, %cst_25 {dimension_numbers = #tpu.dot_dimension_numbers<[1], [0], [0], [1], [0, 0, 1, 1], [], []>} : vector<32x256xbf16>, vector<256x128xbf16>, vector<32x128xf32> -> vector<32x128xf32>
    %c0_26 = arith.constant 0 : index
    %c0_27 = arith.constant 0 : index
    %36 = vector.load %arg11[%c0_26, %c0_27] : memref<1x128xf32, #tpu.memory_space<vmem>>, vector<1x128xf32>
    %37 = vector.broadcast %36 : vector<1x128xf32> to vector<32x128xf32>
    %38 = arith.addf %35, %37 : vector<32x128xf32>
    %39 = vector.extract_strided_slice %38 {offsets = [0, 0], sizes = [32, 1], strides = [1, 1]} : vector<32x128xf32> to vector<32x1xf32>
    %c0_28 = arith.constant 0 : index
    %c0_29 = arith.constant 0 : index
    %40 = vector.load %arg13[%c0_28, %c0_29] : memref<32x128xi8, #tpu.memory_space<vmem>>, vector<32x128xi8>
    %41 = arith.sitofp %40 : vector<32x128xi8> to vector<32x128xf32>
    %cst_30 = arith.constant 0.000000e+00 : f32
    %42 = vector.broadcast %cst_30 : f32 to vector<32x128xf32>
    %43 = arith.cmpf one, %41, %42 : vector<32x128xf32>
    %cst_31 = arith.constant -1.000000e+08 : f32
    %44 = vector.broadcast %cst_31 : f32 to vector<32x128xf32>
    %45 = arith.select %43, %25, %44 : vector<32x128xi1>, vector<32x128xf32>
    %cst_32 = arith.constant dense<0xFF800000> : vector<32xf32>
    %46 = vector.multi_reduction <maximumf>, %45, %cst_32 [1] : vector<32x128xf32> to vector<32xf32>
    %47 = vector.shape_cast %46 : vector<32xf32> to vector<32x1xf32>
    %48 = vector.broadcast %47 : vector<32x1xf32> to vector<32x128xf32>
    %49 = arith.subf %45, %48 : vector<32x128xf32>
    %50 = math.exp %49 : vector<32x128xf32>
    %cst_33 = arith.constant dense<0.000000e+00> : vector<32xf32>
    %51 = vector.multi_reduction <add>, %50, %cst_33 [1] : vector<32x128xf32> to vector<32xf32>
    %52 = vector.shape_cast %51 : vector<32xf32> to vector<32x1xf32>
    %53 = tpu.reciprocal %52 {approx = true} : vector<32x1xf32> -> vector<32x1xf32>
    %54 = math.log %52 : vector<32x1xf32>
    %55 = arith.addf %47, %54 : vector<32x1xf32>
    %56 = tpu.iota {dimensions = array<i32: 1>} : vector<32x128xi32>
    %c0_34 = arith.constant 0 : index
    %c0_35 = arith.constant 0 : index
    %57 = vector.load %arg12[%c0_34, %c0_35] : memref<32x1xi32, #tpu.memory_space<vmem>>, vector<32x1xi32>
    %58 = vector.broadcast %57 : vector<32x1xi32> to vector<32x128xi32>
    %59 = arith.cmpi eq, %56, %58 : vector<32x128xi32>
    %60 = arith.extui %59 : vector<32x128xi1> to vector<32x128xi32>
    %61 = arith.sitofp %60 : vector<32x128xi32> to vector<32x128xf32>
    %62 = arith.mulf %45, %61 : vector<32x128xf32>
    %cst_36 = arith.constant dense<0.000000e+00> : vector<32xf32>
    %63 = vector.multi_reduction <add>, %62, %cst_36 [1] : vector<32x128xf32> to vector<32xf32>
    %64 = vector.shape_cast %63 : vector<32xf32> to vector<32x1xf32>
    %65 = arith.subf %64, %55 : vector<32x1xf32>
    %66 = arith.mulf %50, %45 : vector<32x128xf32>
    %cst_37 = arith.constant dense<0.000000e+00> : vector<32xf32>
    %67 = vector.multi_reduction <add>, %66, %cst_37 [1] : vector<32x128xf32> to vector<32xf32>
    %68 = vector.shape_cast %67 : vector<32xf32> to vector<32x1xf32>
    %69 = arith.mulf %68, %53 : vector<32x1xf32>
    %70 = arith.subf %55, %69 : vector<32x1xf32>
    %71 = tpu.iota {dimensions = array<i32: 1>} : vector<32x8xi32>
    %c0_i32 = arith.constant 0 : i32
    %72 = vector.broadcast %c0_i32 : i32 to vector<32x8xi32>
    %73 = arith.cmpi eq, %71, %72 : vector<32x8xi32>
    %c1_i32 = arith.constant 1 : i32
    %74 = vector.broadcast %c1_i32 : i32 to vector<32x8xi32>
    %75 = arith.cmpi eq, %71, %74 : vector<32x8xi32>
    %76 = vector.shape_cast %39 : vector<32x1xf32> to vector<32x1xf32>
    %77 = vector.broadcast %76 : vector<32x1xf32> to vector<32x8xf32>
    %78 = vector.shape_cast %70 : vector<32x1xf32> to vector<32x1xf32>
    %79 = vector.broadcast %78 : vector<32x1xf32> to vector<32x8xf32>
    %80 = arith.select %75, %77, %79 : vector<32x8xi1>, vector<32x8xf32>
    %81 = vector.shape_cast %65 : vector<32x1xf32> to vector<32x1xf32>
    %82 = vector.broadcast %81 : vector<32x1xf32> to vector<32x8xf32>
    %83 = arith.select %73, %82, %80 : vector<32x8xi1>, vector<32x8xf32>
    %c0_38 = arith.constant 0 : index
    %c0_39 = arith.constant 0 : index
    %84 = vector.load %arg14[%c0_38, %c0_39] : memref<32x8xf32, #tpu.memory_space<vmem>>, vector<32x8xf32>
    tpu.vector_store %arg14[%c0_38, %c0_39], %83 {strides = array<i32>} : memref<32x8xf32, #tpu.memory_space<vmem>>, vector<32x8xf32>,
    return
  }
  func.func @transform_0(%arg0: i32) -> (i32, i32) {
    %c0_i32 = arith.constant 0 : i32
    %c0_i32_0 = arith.constant 0 : i32
    return %arg0, %c0_i32 : i32, i32
  }
  func.func @transform_1(%arg0: i32) -> (i32, i32) {
    %c0_i32 = arith.constant 0 : i32
    %c0_i32_0 = arith.constant 0 : i32
    %c0_i32_1 = arith.constant 0 : i32
    return %c0_i32, %c0_i32_0 : i32, i32
  }
  func.func @transform_2(%arg0: i32) -> (i32, i32) {
    %c0_i32 = arith.constant 0 : i32
    %c0_i32_0 = arith.constant 0 : i32
    %c0_i32_1 = arith.constant 0 : i32
    return %c0_i32, %c0_i32_0 : i32, i32
  }
  func.func @transform_3(%arg0: i32) -> (i32, i32) {
    %c0_i32 = arith.constant 0 : i32
    %c0_i32_0 = arith.constant 0 : i32
    %c0_i32_1 = arith.constant 0 : i32
    return %c0_i32, %c0_i32_0 : i32, i32
  }
  func.func @transform_4(%arg0: i32) -> (i32, i32) {
    %c0_i32 = arith.constant 0 : i32
    %c0_i32_0 = arith.constant 0 : i32
    %c0_i32_1 = arith.constant 0 : i32
    return %c0_i32, %c0_i32_0 : i32, i32
  }
  func.func @transform_5(%arg0: i32) -> (i32, i32) {
    %c0_i32 = arith.constant 0 : i32
    %c0_i32_0 = arith.constant 0 : i32
    %c0_i32_1 = arith.constant 0 : i32
    return %c0_i32, %c0_i32_0 : i32, i32
  }
  func.func @transform_6(%arg0: i32) -> (i32, i32) {
    %c0_i32 = arith.constant 0 : i32
    %c0_i32_0 = arith.constant 0 : i32
    %c0_i32_1 = arith.constant 0 : i32
    return %c0_i32, %c0_i32_0 : i32, i32
  }
  func.func @transform_7(%arg0: i32) -> (i32, i32) {
    %c0_i32 = arith.constant 0 : i32
    %c0_i32_0 = arith.constant 0 : i32
    %c0_i32_1 = arith.constant 0 : i32
    return %c0_i32, %c0_i32_0 : i32, i32
  }
  func.func @transform_8(%arg0: i32) -> (i32, i32) {
    %c0_i32 = arith.constant 0 : i32
    %c0_i32_0 = arith.constant 0 : i32
    %c0_i32_1 = arith.constant 0 : i32
    return %c0_i32, %c0_i32_0 : i32, i32
  }
  func.func @transform_9(%arg0: i32) -> (i32, i32) {
    %c0_i32 = arith.constant 0 : i32
    %c0_i32_0 = arith.constant 0 : i32
    %c0_i32_1 = arith.constant 0 : i32
    return %c0_i32, %c0_i32_0 : i32, i32
  }
  func.func @transform_10(%arg0: i32) -> (i32, i32) {
    %c0_i32 = arith.constant 0 : i32
    %c0_i32_0 = arith.constant 0 : i32
    %c0_i32_1 = arith.constant 0 : i32
    return %c0_i32, %c0_i32_0 : i32, i32
  }
  func.func @transform_11(%arg0: i32) -> (i32, i32) {
    %c0_i32 = arith.constant 0 : i32
    %c0_i32_0 = arith.constant 0 : i32
    return %arg0, %c0_i32 : i32, i32
  }
  func.func @transform_12(%arg0: i32) -> (i32, i32) {
    %c0_i32 = arith.constant 0 : i32
    %c0_i32_0 = arith.constant 0 : i32
    return %arg0, %c0_i32 : i32, i32
  }
  func.func @transform_13(%arg0: i32) -> (i32, i32) {
    %c0_i32 = arith.constant 0 : i32
    %c0_i32_0 = arith.constant 0 : i32
    return %arg0, %c0_i32 : i32, i32
  }
}

</mosaic_0001>

<bundles_post_ra>
// kernel: evaluate.1
= control target key start
LH: loop header
LB: loop body
LE: loop exit
PB: predicated region body
PF: predicated region fallthrough
CT: control target
= control target key end

     0   :  { %18 = vsyncpa [#allocation3], 0  ;;  %s5600_s0 = inlined_call_operand.vmem [shape: f32[2,1024], index: 0, kind: input, shape index: {}]   ;;  %s5601_s1 = inlined_call_operand.hbm [shape: bf16[1024,512], index: 1, kind: input, shape index: {}]   ;;  %s5602_s2 = inlined_call_operand.vmem [shape: f32[1,512], index: 2, kind: input, shape index: {}]   ;;  %s5603_s3 = inlined_call_operand.hbm [shape: bf16[256,256], index: 3, kind: input, shape index: {}]   ;;  %s5604_s4 = inlined_call_operand.vmem [shape: f32[1,256], index: 4, kind: input, shape index: {}]   ;;  %s5605_s5 = inlined_call_operand.vmem [shape: bf16[256,128], index: 5, kind: input, shape index: {}]   ;;  %s5606_s6 = inlined_call_operand.vmem [shape: f32[1,128], index: 6, kind: input, shape index: {}]   ;;  %s5607_s7 = inlined_call_operand.hbm [shape: bf16[256,256], index: 7, kind: input, shape index: {}]   ;;  %s5608_s8 = inlined_call_operand.vmem [shape: f32[1,256], index: 8, kind: input, shape index: {}]   ;;  %s5609_s9 = inlined_call_operand.hbm [shape: bf16[256,128], index: 9, kind: input, shape index: {}]   ;;  %s5610_s10 = inlined_call_operand.vmem [shape: f32[1,128], index: 10, kind: input, shape index: {}]   ;;  %s5611_s11 = inlined_call_operand.vmem [shape: s32[2,1], index: 11, kind: input, shape index: {}]   ;;  %s5612_s12 = inlined_call_operand.vmem [shape: s8[2,128], index: 12, kind: input, shape index: {}]   ;;  %s5613_s13 = inlined_call_operand.vmem [shape: f32[2,8], index: 13, kind: output, shape index: {}]  }
   0x1   :  { %19 = vsyncpa [#allocation5], 0 }
   0x2   :  { %20 = vsyncpa [#allocation8], 0  ;;  %s4996_s25 = smov [#allocation4]   ;;  %s4902_s29 = scalar_lea.hbm %s5603_s3, 4096 }
   0x3   :  { %s42_s26 = sshll.u32 %s4996_s25, 4  ;;  %p4903_p0 = scmp.ne.s32.totalorder %s5603_s3, %s4902_s29  ;;  %s43_s26 = int_to_ptr.vmem [resolvable:$true] %s42_s26 }
   0x4   :  { %p4906_p1 = scmp.lt.u32.totalorder %s4902_s29, %s5603_s3 }
   0x6   :  { %p4908_p2 = pnand %p4906_p1, %p4903_p0 }
   0x8   :  { %4911 = shalt.err (!%p4908_p2)
}
   0x9   :  { %s4912_s17 = scalar_lea.vmem %s43_s26, 4096  ;;  %p4917_p4 = scmp.lt.s32.totalorder %s43_s26, %s43_s26 }
   0xa   :  { %p4913_p3 = scmp.ne.s32.totalorder %s43_s26, %s4912_s17  ;;  %p4918_p5 = scmp.lt.s32.totalorder %s4912_s17, %s4912_s17 }
   0xc   :  { %p4919_p6 = por %p4918_p5, %p4917_p4 }
   0xe   :  { %p4920_p7 = pnand %p4919_p6, %p4913_p3 }
  0x10   :  { %4923 = shalt.err (!%p4920_p7)
}
  0x11   :  { %s4997_s18 = smov 128   ;;  %s4998_s19 = smov 8  }
  0x12   :  { %48 = dma.hbm_to_vmem [thread:$0]  %s5603_s3, 4096, %s43_s26, [#allocation5], %s4997_s18, %s4997_s18, %s4998_s19  }
  0x13   :  { %s4999_s22 = smov [#allocation2]   ;;  %s4924_s27 = scalar_lea.hbm %s5601_s1, 32768 }
  0x14   :  { %s28_s23 = sshll.u32 %s4999_s22, 4  ;;  %p4925_p8 = scmp.ne.s32.totalorder %s5601_s1, %s4924_s27  ;;  %s29_s23 = int_to_ptr.vmem [resolvable:$true] %s28_s23 }
  0x15   :  { %p4928_p9 = scmp.lt.u32.totalorder %s4924_s27, %s5601_s1 }
  0x17   :  { %p4930_p10 = pnand %p4928_p9, %p4925_p8 }
  0x19   :  { %4933 = shalt.err (!%p4930_p10)
}
  0x1a   :  { %s4934_s15 = scalar_lea.vmem %s29_s23, 32768  ;;  %p4939_p12 = scmp.lt.s32.totalorder %s29_s23, %s29_s23 }
  0x1b   :  { %p4935_p11 = scmp.ne.s32.totalorder %s29_s23, %s4934_s15  ;;  %p4940_p13 = scmp.lt.s32.totalorder %s4934_s15, %s4934_s15 }
  0x1d   :  { %p4941_p0 = por %p4940_p13, %p4939_p12 }
  0x1f   :  { %p4942_p1 = pnand %p4941_p0, %p4935_p11 }
  0x21   :  { %4945 = shalt.err (!%p4942_p1)
}
  0x22   :  { %s5000_s3 = smov 256   ;;  %s5001_s26 = smov 16  }
  0x23   :  { %34 = dma.hbm_to_vmem [thread:$0]  %s5601_s1, 32768, %s29_s23, [#allocation3], %s5000_s3, %s5000_s3, %s5001_s26  }
  0x24   :  { %s5002_s20 = smov [#allocation6]   ;;  %s5003_s22 = smov [#allocation7]  }
  0x25   :  { %s60_s21 = sshll.u32 %s5002_s20, 4  ;;  %s74_s24 = sshll.u32 %s5003_s22, 4  ;;  %s61_s21 = int_to_ptr.vmem [resolvable:$true] %s60_s21  ;;  %s5108_s24 = int_to_ptr.vmem [resolvable:$true] %s74_s24 }
  0x26   :  { %s4946_s28 = scalar_lea.hbm %s5607_s7, 4096 }
  0x27   :  { %p4947_p2 = scmp.ne.s32.totalorder %s5607_s7, %s4946_s28  ;;  %p4950_p3 = scmp.lt.u32.totalorder %s4946_s28, %s5607_s7 }
  0x29   :  { %p4952_p4 = pnand %p4950_p3, %p4947_p2 }
  0x2b   :  { %4955 = shalt.err (!%p4952_p4)
}
  0x2c   :  { %s4956_s1 = scalar_lea.vmem %s61_s21, 4096  ;;  %p4961_p6 = scmp.lt.s32.totalorder %s61_s21, %s61_s21 }
  0x2d   :  { %p4957_p5 = scmp.ne.s32.totalorder %s61_s21, %s4956_s1  ;;  %p4962_p7 = scmp.lt.s32.totalorder %s4956_s1, %s4956_s1 }
  0x2f   :  { %p4963_p8 = por %p4962_p7, %p4961_p6 }
  0x31   :  { %p4964_p9 = pnand %p4963_p8, %p4957_p5 }
  0x33   :  { %4967 = shalt.err (!%p4964_p9)
}
  0x34   :  { %66 = dma.hbm_to_vmem [thread:$0]  %s5607_s7, 4096, %s61_s21, [#allocation5], %s4997_s18, %s4997_s18, %s4998_s19  }
  0x35   :  { %s4968_s17 = scalar_lea.hbm %s5609_s9, 2048 }
  0x36   :  { %p4969_p10 = scmp.ne.s32.totalorder %s5609_s9, %s4968_s17  ;;  %p4972_p11 = scmp.lt.u32.totalorder %s4968_s17, %s5609_s9 }
  0x38   :  { %p4974_p12 = pnand %p4972_p11, %p4969_p10 }
  0x3a   :  { %4977 = shalt.err (!%p4974_p12)
}
  0x3b   :  { %s4978_s28 = scalar_lea.vmem %s5108_s24, 2048  ;;  %p4983_p0 = scmp.lt.s32.totalorder %s5108_s24, %s5108_s24 }
  0x3c   :  { %p4979_p13 = scmp.ne.s32.totalorder %s5108_s24, %s4978_s28  ;;  %p4984_p1 = scmp.lt.s32.totalorder %s4978_s28, %s4978_s28 }
  0x3e   :  { %p4985_p2 = por %p4984_p1, %p4983_p0 }
  0x40   :  { %p4986_p3 = pnand %p4985_p2, %p4979_p13 }
  0x42   :  { %4989 = shalt.err (!%p4986_p3)
}
  0x43   :  { %s5004_s7 = smov 64   ;;  %s5005_s18 = smov 4  }
  0x44   :  { %80 = dma.hbm_to_vmem [thread:$0]  %s5609_s9, 2048, %s5108_s24, [#allocation8], %s5004_s7, %s5004_s7, %s5005_s18  }
  0x45   :  { %4990 = dma.done.wait [#allocation3], 32768  }
  0x46   :  { %4991 = vsyncadd [#allocation3], 4294934528 }
  0x47   :  { %4992 = dma.done.wait [#allocation5], 8192  }
  0x48   :  { %4993 = vsyncadd [#allocation5], 4294959104 }
  0x49   :  { %4994 = dma.done.wait [#allocation8], 2048  }
  0x4a   :  { %4995 = vsyncadd [#allocation8], 4294965248  ;;  %v4310_v0 = vld [vmem:[#allocation2 + $0x4] ss:$16 sps:$4 sm:$0xff]   ;;  %v4312_v1 = vld [vmem:[#allocation2] ss:$16 sps:$4 sm:$0xff]   ;;  %v171_v11 = vlaneseq }
  0x4b   :  { %2058 = vmatprep.subr.bf16.mxu0 %v4310_v0  ;;  %v4313_v2 = vld [vmem:[#allocation2 + $0x24] ss:$16 sps:$4 sm:$0xff]   ;;  %v4315_v3 = vld [vmem:[#allocation2 + $0x20] ss:$16 sps:$4 sm:$0xff]   ;;  %v5006_v9 = vmov 1983009808  }
  0x4c   :  { %2059 = vmatpush1.bf16.msra.mxu0 %v4312_v1  ;;  %v4316_v4 = vld [vmem:[#allocation2 + $0x44] ss:$16 sps:$4 sm:$0xff]   ;;  %v4318_v5 = vld [vmem:[#allocation2 + $0x40] ss:$16 sps:$4 sm:$0xff]   ;;  %v169_v10 = vunpack.c.l.s4 %v5006_v9  ;;  %v5143_v15 = vshrl.u32 %v171_v11, 7  ;;  %vm3768_vm14 = vcmask 64512  }
  0x4d   :  { %2060 = vmatprep.subr.bf16.mxu0 %v4313_v2  ;;  %v4319_v6 = vld [vmem:[#allocation2 + $0x64] ss:$16 sps:$4 sm:$0xff]   ;;  %v4321_v7 = vld [vmem:[#allocation2 + $0x60] ss:$16 sps:$4 sm:$0xff]   ;;  %v4391_v38 = vld [vmem:[#allocation2 + $0xc] ss:$16 sps:$4 sm:$0xff]  }
  0x4e   :  { %v4322_v8 = vld [vmem:[#allocation2 + $0x84] ss:$16 sps:$4 sm:$0xff]   ;;  %v4324_v12 = vld [vmem:[#allocation2 + $0x80] ss:$16 sps:$4 sm:$0xff]   ;;  %v170_v14 = vunpack.c.0.s8 %v169_v10  ;;  %2270 = vmatprep.subr.bf16.mxu1 %v4391_v38  ;;  %v4396_v40 = vld [vmem:[#allocation2 + $0x8] ss:$16 sps:$4 sm:$0xff]  }
  0x4f   :  { %v4325_v13 = vld [vmem:[#allocation2 + $0xa4] ss:$16 sps:$4 sm:$0xff]   ;;  %v4327_v16 = vld [vmem:[#allocation2 + $0xa0] ss:$16 sps:$4 sm:$0xff]   ;;  %v4397_v41 = vld [vmem:[#allocation2 + $0x2c] ss:$16 sps:$4 sm:$0xff]   ;;  %2271 = vmatpush1.bf16.msra.mxu1 %v4396_v40 }
  0x50   :  { %2061 = vmatpush1.bf16.msra.mxu0 %v4315_v3  ;;  %v4328_v17 = vld [vmem:[#allocation2 + $0xc4] ss:$16 sps:$4 sm:$0xff]   ;;  %v4330_v18 = vld [vmem:[#allocation2 + $0xc0] ss:$16 sps:$4 sm:$0xff]   ;;  %v5146_v19 = vsub.s32 %v170_v14, %v5143_v15  ;;  %2272 = vmatprep.subr.bf16.mxu1 %v4397_v41  ;;  %v4402_v43 = vld [vmem:[#allocation2 + $0x28] ss:$16 sps:$4 sm:$0xff]  }
  0x51   :  { %2062 = vmatprep.subr.bf16.mxu0 %v4316_v4  ;;  %v4331_v20 = vld [vmem:[#allocation2 + $0xe4] ss:$16 sps:$4 sm:$0xff]   ;;  %v4358_v21 = vld [vmem:[%s5600_s0] ss:$16 sps:$4 sm:$0xff]   ;;  %v4403_v44 = vld [vmem:[#allocation2 + $0x4c] ss:$16 sps:$4 sm:$0xff]  }
  0x52   :  { %v4361_v22 = vld [vmem:[%s5600_s0 + $0x20] ss:$16 sps:$4 sm:$0xff]   ;;  %v5158_v24 = vrot.slane %v4358_v21, %v5146_v19  ;;  %v4334_v29 = vld [vmem:[#allocation2 + $0x104] ss:$16 sps:$4 sm:$0xff]   ;;  %v4408_v47 = vld [vmem:[#allocation2 + $0x48] ss:$16 sps:$4 sm:$0xff]  }
  0x53   :  { %v4364_v23 = vld [vmem:[%s5600_s0 + $0x40] ss:$16 sps:$4 sm:$0xff]   ;;  %v5161_v25 = vrot.slane %v4361_v22, %v5146_v19  ;;  %v4337_v34 = vld [vmem:[#allocation2 + $0x124] ss:$16 sps:$4 sm:$0xff]   ;;  %2273 = vmatpush1.bf16.msra.mxu1 %v4402_v43  ;;  %v4409_v48 = vld [vmem:[#allocation2 + $0x6c] ss:$16 sps:$4 sm:$0xff]  }
  0x54   :  { %2063 = vmatpush1.bf16.msra.mxu0 %v4318_v5  ;;  %v4367_v26 = vld [vmem:[%s5600_s0 + $0x60] ss:$16 sps:$4 sm:$0xff]   ;;  %v5167_v28 = vrot.slane %v4364_v23, %v5146_v19  ;;  %v4340_v37 = vld [vmem:[#allocation2 + $0x144] ss:$16 sps:$4 sm:$0xff]   ;;  %2274 = vmatprep.subr.bf16.mxu1 %v4403_v44  ;;  %v4414_v51 = vld [vmem:[#allocation2 + $0x68] ss:$16 sps:$4 sm:$0xff]  }
  0x55   :  { %2064 = vmatprep.subr.bf16.mxu0 %v4319_v6  ;;  %v4333_v27 = vld [vmem:[#allocation2 + $0xe0] ss:$16 sps:$4 sm:$0xff]   ;;  %v197_v30 = vcombine.high %v5158_v24, %v5161_v25  ;;  %v5172_v31 = vrot.slane %v4367_v26, %v5146_v19  ;;  %v4343_v42 = vld [vmem:[#allocation2 + $0x164] ss:$16 sps:$4 sm:$0xff]   ;;  %v4415_v52 = vld [vmem:[#allocation2 + $0x8c] ss:$16 sps:$4 sm:$0xff]   ;;  %v196_v2 = vcombine.low %v5158_v24, %v5161_v25 }
  0x56   :  { %v4336_v33 = vld [vmem:[#allocation2 + $0x100] ss:$16 sps:$4 sm:$0xff]   ;;  %v4346_v46 = vld [vmem:[#allocation2 + $0x184] ss:$16 sps:$4 sm:$0xff]   ;;  %v4420_v55 = vld [vmem:[#allocation2 + $0x88] ss:$16 sps:$4 sm:$0xff]  }
  0x57   :  { %v269_v32 = vcombine.high %v5167_v28, %v5172_v31  ;;  %v4339_v36 = vld [vmem:[#allocation2 + $0x120] ss:$16 sps:$4 sm:$0xff]   ;;  %v4349_v50 = vld [vmem:[#allocation2 + $0x1a4] ss:$16 sps:$4 sm:$0xff]   ;;  %2275 = vmatpush1.bf16.msra.mxu1 %v4408_v47  ;;  %v4421_v57 = vld [vmem:[#allocation2 + $0xac] ss:$16 sps:$4 sm:$0xff]   ;;  %v268_v3 = vcombine.low %v5167_v28, %v5172_v31 }
  0x58   :  { %2065 = vmatpush1.bf16.msra.mxu0 %v4321_v7  ;;  %v4342_v39 = vld [vmem:[#allocation2 + $0x140] ss:$16 sps:$4 sm:$0xff]   ;;  %2276 = vmatprep.subr.bf16.mxu1 %v4409_v48  ;;  %v4352_v54 = vld [vmem:[#allocation2 + $0x1c4] ss:$16 sps:$4 sm:$0xff]   ;;  %v4426_v59 = vld [vmem:[#allocation2 + $0xa8] ss:$16 sps:$4 sm:$0xff]  }
  0x59   :  { %2066 = vmatprep.subr.bf16.mxu0 %v4322_v8  ;;  %v485_v35 = vpack.c.bf16 %v269_v32, %v197_v30  ;;  %v4345_v45 = vld [vmem:[#allocation2 + $0x160] ss:$16 sps:$4 sm:$0xff]   ;;  %v4355_v58 = vld [vmem:[#allocation2 + $0x1e4] ss:$16 sps:$4 sm:$0xff]   ;;  %v4427_v60 = vld [vmem:[#allocation2 + $0xcc] ss:$16 sps:$4 sm:$0xff]  }
  0x5a   :  { %v4348_v49 = vld [vmem:[#allocation2 + $0x180] ss:$16 sps:$4 sm:$0xff]   ;;  %v4360_v61 = vld [vmem:[%s5600_s0 + $0x4] ss:$16 sps:$4 sm:$0xff]   ;;  %v4432_v9 = vld [vmem:[#allocation2 + $0xc8] ss:$16 sps:$4 sm:$0xff]  }
  0x5b   :  { %2090 = vmatprep.mubr.bf16.mxu0 %v485_v35  ;;  %2302 = vmatprep.mubr.bf16.mxu1 %v485_v35  ;;  %v4351_v53 = vld [vmem:[#allocation2 + $0x1a0] ss:$16 sps:$4 sm:$0xff]   ;;  %v4363_v63 = vld [vmem:[%s5600_s0 + $0x24] ss:$16 sps:$4 sm:$0xff]   ;;  %v4459_v43 = vld [vmem:[#allocation2 + $0x14c] ss:$16 sps:$4 sm:$0xff]  }
  0x5c   :  { %2067 = vmatpush1.bf16.msra.mxu0 %v4324_v12  ;;  %2277 = vmatpush1.bf16.msra.mxu1 %v4414_v51  ;;  %v4354_v56 = vld [vmem:[#allocation2 + $0x1c0] ss:$16 sps:$4 sm:$0xff]   ;;  %v4366_v0 = vld [vmem:[%s5600_s0 + $0x44] ss:$16 sps:$4 sm:$0xff]   ;;  %v5214_v24 = vrot.slane %v4363_v63, %v5146_v19  ;;  %v4465_v47 = vld [vmem:[#allocation2 + $0x16c] ss:$16 sps:$4 sm:$0xff]  }
  0x5d   :  { %2068 = vmatprep.subr.bf16.mxu0 %v4325_v13  ;;  %2278 = vmatprep.subr.bf16.mxu1 %v4415_v52  ;;  %v4357_v62 = vld [vmem:[#allocation2 + $0x1e0] ss:$16 sps:$4 sm:$0xff]   ;;  %v4369_v1 = vld [vmem:[%s5600_s0 + $0x64] ss:$16 sps:$4 sm:$0xff]   ;;  %v4433_v13 = vld [vmem:[#allocation2 + $0xec] ss:$16 sps:$4 sm:$0xff]   ;;  %v5217_v25 = vrot.slane %v4366_v0, %v5146_v19 }
  0x5e   :  { %v4435_v4 = vld [vmem:[%s5600_s0 + $0x80] ss:$16 sps:$4 sm:$0xff]   ;;  %v4372_v8 = vld [vmem:[#allocation2 + $0x204] ss:$16 sps:$4 sm:$0xff]   ;;  %v5220_v26 = vrot.slane %v4369_v1, %v5146_v19  ;;  %v4471_v51 = vld [vmem:[#allocation2 + $0x18c] ss:$16 sps:$4 sm:$0xff]  }
  0x5f   :  { %v4437_v5 = vld [vmem:[%s5600_s0 + $0xa0] ss:$16 sps:$4 sm:$0xff]   ;;  %v318_v10 = vrot.slane %v4435_v4, %v5146_v19  ;;  %v4375_v22 = vld [vmem:[#allocation2 + $0x224] ss:$16 sps:$4 sm:$0xff]   ;;  %v4489_v63 = vld [vmem:[#allocation2 + $0x1ec] ss:$16 sps:$4 sm:$0xff]  }
  0x60   :  { %2069 = vmatpush1.bf16.msra.mxu0 %v4327_v16  ;;  %2279 = vmatpush1.bf16.msra.mxu1 %v4420_v55  ;;  %v4439_v6 = vld [vmem:[%s5600_s0 + $0xc0] ss:$16 sps:$4 sm:$0xff]   ;;  %v332_v12 = vrot.slane %v4437_v5, %v5146_v19  ;;  %v4378_v35 = vld [vmem:[#allocation2 + $0x244] ss:$16 sps:$4 sm:$0xff]   ;;  %v4477_v55 = vld [vmem:[#allocation2 + $0x1ac] ss:$16 sps:$4 sm:$0xff]  }
  0x61   :  { %2070 = vmatprep.subr.bf16.mxu0 %v4328_v17  ;;  %2280 = vmatprep.subr.bf16.mxu1 %v4421_v57  ;;  %v4441_v7 = vld [vmem:[%s5600_s0 + $0xe0] ss:$16 sps:$4 sm:$0xff]   ;;  %v390_v14 = vrot.slane %v4439_v6, %v5146_v19  ;;  %v5208_v17 = vpack.c.bf16 %v268_v3, %v196_v2  ;;  %v4381_v40 = vld [vmem:[#allocation2 + $0x264] ss:$16 sps:$4 sm:$0xff]   ;;  %v4494_v2 = vld [vmem:[#allocation2 + $0x1e8] ss:$16 sps:$4 sm:$0xff]  }
  0x62   :  { %v404_v16 = vrot.slane %v4441_v7, %v5146_v19  ;;  %v4370_v21 = vld [vmem:[#allocation2 + $0x200] ss:$16 sps:$4 sm:$0xff]   ;;  %v340_v30 = vcombine.low %v318_v10, %v332_v12  ;;  %v4395_v57 = vld [vmem:[#allocation2 + $0x2e4] ss:$16 sps:$4 sm:$0xff]   ;;  %v4497_v3 = vld [vmem:[#allocation2 + $0x20c] ss:$16 sps:$4 sm:$0xff]  }
  0x63   :  { %v4373_v32 = vld [vmem:[#allocation2 + $0x220] ss:$16 sps:$4 sm:$0xff]   ;;  %v4407_v1 = vld [vmem:[#allocation2 + $0x324] ss:$16 sps:$4 sm:$0xff]   ;;  %v4495_v6 = vld [vmem:[#allocation2 + $0x208] ss:$16 sps:$4 sm:$0xff]  }
  0x64   :  { %2071 = vmatpush1.bf16.msra.mxu0 %v4330_v18  ;;  %2281 = vmatpush1.bf16.msra.mxu1 %v4426_v59  ;;  %v341_v18 = vcombine.high %v318_v10, %v332_v12  ;;  %v413_v23 = vcombine.high %v390_v14, %v404_v16  ;;  %v412_v31 = vcombine.low %v390_v14, %v404_v16  ;;  %v4379_v44 = vld [vmem:[#allocation2 + $0x260] ss:$16 sps:$4 sm:$0xff]   ;;  %v4483_v59 = vld [vmem:[#allocation2 + $0x1cc] ss:$16 sps:$4 sm:$0xff]   ;;  %v4413_v5 = vld [vmem:[#allocation2 + $0x344] ss:$16 sps:$4 sm:$0xff]  }
  0x65   :  { %2072 = vmatprep.subr.bf16.mxu0 %v4331_v20  ;;  %2282 = vmatprep.subr.bf16.mxu1 %v4427_v60  ;;  %v5211_v20 = vrot.slane %v4360_v61, %v5146_v19  ;;  %v4382_v48 = vld [vmem:[#allocation2 + $0x280] ss:$16 sps:$4 sm:$0xff]   ;;  %v4401_v61 = vld [vmem:[#allocation2 + $0x304] ss:$16 sps:$4 sm:$0xff]   ;;  %v4503_v7 = vld [vmem:[#allocation2 + $0x22c] ss:$16 sps:$4 sm:$0xff]  }
  0x66   :  { %v5222_v28 = vpack.c.bf16 %v413_v23, %v341_v18  ;;  %v5230_v38 = vpack.c.bf16 %v412_v31, %v340_v30  ;;  %v4385_v52 = vld [vmem:[#allocation2 + $0x2a0] ss:$16 sps:$4 sm:$0xff]   ;;  %v4501_v10 = vld [vmem:[#allocation2 + $0x228] ss:$16 sps:$4 sm:$0xff]   ;;  %v4509_v12 = vld [vmem:[#allocation2 + $0x24c] ss:$16 sps:$4 sm:$0xff]  }
  0x67   :  { %v4393_v60 = vld [vmem:[#allocation2 + $0x2e0] ss:$16 sps:$4 sm:$0xff]   ;;  %v4425_v14 = vld [vmem:[#allocation2 + $0x384] ss:$16 sps:$4 sm:$0xff]   ;;  %v4507_v16 = vld [vmem:[#allocation2 + $0x248] ss:$16 sps:$4 sm:$0xff]  }
  0x68   :  { %2073 = vmatpush1.bf16.msra.mxu0 %v4333_v27  ;;  %2283 = vmatpush1.bf16.msra.mxu1 %v4432_v9  ;;  %v4446_v27 = vld [vmem:[#allocation2 + $0xe8] ss:$16 sps:$4 sm:$0xff]   ;;  %v4399_v0 = vld [vmem:[#allocation2 + $0x300] ss:$16 sps:$4 sm:$0xff]   ;;  %v4419_v9 = vld [vmem:[#allocation2 + $0x364] ss:$16 sps:$4 sm:$0xff]  }
  0x69   :  { %2074 = vmatprep.subr.bf16.mxu0 %v4334_v29  ;;  %2284 = vmatprep.subr.bf16.mxu1 %v4433_v13  ;;  %v4447_v29 = vld [vmem:[#allocation2 + $0x10c] ss:$16 sps:$4 sm:$0xff]   ;;  %v4405_v4 = vld [vmem:[#allocation2 + $0x320] ss:$16 sps:$4 sm:$0xff]   ;;  %v4543_v30 = vld [vmem:[%s5600_s0 + $0xe4] ss:$16 sps:$4 sm:$0xff]  }
  0x6a   :  { %v4417_v13 = vld [vmem:[#allocation2 + $0x360] ss:$16 sps:$4 sm:$0xff]   ;;  %v4521_v23 = vld [vmem:[#allocation2 + $0x28c] ss:$16 sps:$4 sm:$0xff]  }
  0x6b   :  { %v4423_v18 = vld [vmem:[#allocation2 + $0x380] ss:$16 sps:$4 sm:$0xff]  }
  0x6c   :  { %2075 = vmatpush1.bf16.msra.mxu0 %v4336_v33  ;;  %v199_v33 = vcombine.high %v5211_v20, %v5214_v24  ;;  %2285 = vmatpush1.bf16.msra.mxu1 %v4446_v27  ;;  %v4540_v27 = vld [vmem:[%s5600_s0 + $0x84] ss:$16 sps:$4 sm:$0xff]   ;;  %v4429_v31 = vld [vmem:[#allocation2 + $0x3a0] ss:$16 sps:$4 sm:$0xff]  }
  0x6d   :  { %2076 = vmatprep.subr.bf16.mxu0 %v4337_v34  ;;  %v271_v34 = vcombine.high %v5217_v25, %v5220_v26  ;;  %2286 = vmatprep.subr.bf16.mxu1 %v4447_v29  ;;  %v4542_v29 = vld [vmem:[%s5600_s0 + $0xc4] ss:$16 sps:$4 sm:$0xff]  }
  0x6f   :  { %v5232_v41 = vpack.c.bf16 %v271_v34, %v199_v33  ;;  %v4519_v33 = vld [vmem:[#allocation2 + $0x288] ss:$16 sps:$4 sm:$0xff]   ;;  %v4527_v34 = vld [vmem:[#allocation2 + $0x2ac] ss:$16 sps:$4 sm:$0xff]  }
  0x70   :  { %2077 = vmatpush1.bf16.msra.mxu0 %v4339_v36  ;;  %v4452_v36 = vld [vmem:[#allocation2 + $0x108] ss:$16 sps:$4 sm:$0xff]  }
  0x71   :  { %2078 = vmatprep.subr.bf16.mxu0 %v4340_v37  ;;  %v4453_v37 = vld [vmem:[#allocation2 + $0x12c] ss:$16 sps:$4 sm:$0xff]   ;;  %2287 = vmatpush1.bf16.msra.mxu1 %v4452_v36 }
  0x72   :  { %2288 = vmatprep.subr.bf16.mxu1 %v4453_v37  ;;  %v397_v37 = vrot.slane %v4542_v29, %v5146_v19  ;;  %v4491_v29 = vld [vmem:[#allocation2 + $0x4c0] ss:$16 sps:$4 sm:$0xff]  }
  0x74   :  { %2079 = vmatpush1.bf16.msra.mxu0 %v4342_v39  ;;  %v4376_v39 = vld [vmem:[#allocation2 + $0x240] ss:$16 sps:$4 sm:$0xff]  }
  0x75   :  { %2080 = vmatprep.subr.bf16.mxu0 %v4343_v42  ;;  %v4458_v42 = vld [vmem:[#allocation2 + $0x128] ss:$16 sps:$4 sm:$0xff]  }
  0x76   :  { %2289 = vmatpush1.bf16.msra.mxu1 %v4458_v42  ;;  %v4449_v42 = vld [vmem:[#allocation2 + $0x3e0] ss:$16 sps:$4 sm:$0xff]  }
  0x77   :  { %2290 = vmatprep.subr.bf16.mxu1 %v4459_v43  ;;  %v4533_v43 = vld [vmem:[#allocation2 + $0x2cc] ss:$16 sps:$4 sm:$0xff]  }
  0x78   :  { %2081 = vmatpush1.bf16.msra.mxu0 %v4345_v45  ;;  %v4384_v45 = vld [vmem:[#allocation2 + $0x284] ss:$16 sps:$4 sm:$0xff]  }
  0x79   :  { %2082 = vmatprep.subr.bf16.mxu0 %v4346_v46  ;;  %v4464_v46 = vld [vmem:[#allocation2 + $0x148] ss:$16 sps:$4 sm:$0xff]  }
  0x7a   :  { %2291 = vmatpush1.bf16.msra.mxu1 %v4464_v46  ;;  %v4457_v46 = vld [vmem:[#allocation2 + $0x404] ss:$16 sps:$4 sm:$0xff]  }
  0x7b   :  { %2292 = vmatprep.subr.bf16.mxu1 %v4465_v47 }
  0x7c   :  { %2083 = vmatpush1.bf16.msra.mxu0 %v4348_v49  ;;  %v4387_v49 = vld [vmem:[#allocation2 + $0x2a4] ss:$16 sps:$4 sm:$0xff]  }
  0x7d   :  { %2084 = vmatprep.subr.bf16.mxu0 %v4349_v50  ;;  %v4470_v50 = vld [vmem:[#allocation2 + $0x168] ss:$16 sps:$4 sm:$0xff]  }
  0x7e   :  { %2293 = vmatpush1.bf16.msra.mxu1 %v4470_v50  ;;  %v4558_v50 = vld [vmem:[%s5600_s0 + $0x28] ss:$16 sps:$4 sm:$0xff]  }
  0x7f   :  { %2294 = vmatprep.subr.bf16.mxu1 %v4471_v51  ;;  %v4560_v51 = vld [vmem:[%s5600_s0 + $0x48] ss:$16 sps:$4 sm:$0xff]  }
  0x80   :  { %2085 = vmatpush1.bf16.msra.mxu0 %v4351_v53  ;;  %v4390_v53 = vld [vmem:[#allocation2 + $0x2c4] ss:$16 sps:$4 sm:$0xff]  }
  0x81   :  { %2086 = vmatprep.subr.bf16.mxu0 %v4352_v54  ;;  %v4476_v54 = vld [vmem:[#allocation2 + $0x188] ss:$16 sps:$4 sm:$0xff]  }
  0x82   :  { %2295 = vmatpush1.bf16.msra.mxu1 %v4476_v54  ;;  %v4463_v54 = vld [vmem:[#allocation2 + $0x424] ss:$16 sps:$4 sm:$0xff]  }
  0x83   :  { %2296 = vmatprep.subr.bf16.mxu1 %v4477_v55 }
  0x84   :  { %2087 = vmatpush1.bf16.msra.mxu0 %v4354_v56  ;;  %v4388_v56 = vld [vmem:[#allocation2 + $0x2c0] ss:$16 sps:$4 sm:$0xff]  }
  0x85   :  { %2088 = vmatprep.subr.bf16.mxu0 %v4355_v58  ;;  %v4482_v58 = vld [vmem:[#allocation2 + $0x1a8] ss:$16 sps:$4 sm:$0xff]  }
  0x86   :  { %2297 = vmatpush1.bf16.msra.mxu1 %v4482_v58 }
  0x87   :  { %2298 = vmatprep.subr.bf16.mxu1 %v4483_v59  ;;  %v4537_v59 = vld [vmem:[#allocation2 + $0x2e8] ss:$16 sps:$4 sm:$0xff]  }
  0x88   :  { %2089 = vmatpush1.bf16.msra.mxu0 %v4357_v62  ;;  %v4488_v62 = vld [vmem:[#allocation2 + $0x1c8] ss:$16 sps:$4 sm:$0xff]  }
  0x89   :  { %2111 = vmatprep.subr.bf16.mxu0 %v4372_v8  ;;  %v4411_v8 = vld [vmem:[#allocation2 + $0x340] ss:$16 sps:$4 sm:$0xff]  }
  0x8a   :  { %2299 = vmatpush1.bf16.msra.mxu1 %v4488_v62 }
  0x8b   :  { %2091 = vmatmul.mubr.bf16.vlgmr.msra.gmra.mrb[0].mxu0 %v5208_v17  ;;  %2300 = vmatprep.subr.bf16.mxu1 %v4489_v63  ;;  %v4461_v63 = vld [vmem:[#allocation2 + $0x420] ss:$16 sps:$4 sm:$0xff]  }
  0x8c   :  { %2112 = vmatpush1.bf16.msra.mxu0 %v4370_v21  ;;  %2100 = vmatprep.mubr.bf16.mxu0 %v5222_v28  ;;  %v4515_v21 = vld [vmem:[#allocation2 + $0x26c] ss:$16 sps:$4 sm:$0xff]  }
  0x8d   :  { %2113 = vmatprep.subr.bf16.mxu0 %v4375_v22  ;;  %v4431_v22 = vld [vmem:[#allocation2 + $0x3a4] ss:$16 sps:$4 sm:$0xff]  }
  0x8e   :  { %2301 = vmatpush1.bf16.msra.mxu1 %v4494_v2 }
  0x8f   :  { %2323 = vmatprep.subr.bf16.mxu1 %v4497_v3  ;;  %v4547_v3 = vld [vmem:[#allocation2 + $0x308] ss:$16 sps:$4 sm:$0xff]  }
  0x90   :  { %2114 = vmatpush1.bf16.msra.mxu0 %v4373_v32  ;;  %v4445_v32 = vld [vmem:[#allocation2 + $0x3c4] ss:$16 sps:$4 sm:$0xff]  }
  0x91   :  { %2115 = vmatprep.subr.bf16.mxu0 %v4378_v35  ;;  %2303 = vmatmul.mubr.bf16.vlgmr.msra.gmra.mrb[0].mxu1 %v5208_v17  ;;  %v4513_v17 = vld [vmem:[#allocation2 + $0x268] ss:$16 sps:$4 sm:$0xff]   ;;  %v325_v35 = vrot.slane %v4540_v27, %v5146_v19  ;;  %v4493_v27 = vld [vmem:[#allocation2 + $0x4c4] ss:$16 sps:$4 sm:$0xff]  }
  0x92   :  { %2324 = vmatpush1.bf16.msra.mxu1 %v4495_v6  ;;  %2312 = vmatprep.mubr.bf16.mxu1 %v5222_v28  ;;  %v4541_v28 = vld [vmem:[%s5600_s0 + $0xa4] ss:$16 sps:$4 sm:$0xff]   ;;  %v4467_v6 = vld [vmem:[#allocation2 + $0x440] ss:$16 sps:$4 sm:$0xff]  }
  0x93   :  { %2101 = vmatmul.mubr.bf16.gmra.mrb[4].mxu0 %v5230_v38  ;;  %2325 = vmatprep.subr.bf16.mxu1 %v4503_v7  ;;  %v339_v36 = vrot.slane %v4541_v28, %v5146_v19  ;;  %v4475_v7 = vld [vmem:[#allocation2 + $0x464] ss:$16 sps:$4 sm:$0xff]   ;;  %v4579_v28 = vld [vmem:[#allocation2 + $0x388] ss:$16 sps:$4 sm:$0xff]  }
  0x94   :  { %2116 = vmatpush1.bf16.msra.mxu0 %v4376_v39  ;;  %2143 = vmatprep.mubr.bf16.mxu0 %v5232_v41  ;;  %v4443_v39 = vld [vmem:[#allocation2 + $0x3c0] ss:$16 sps:$4 sm:$0xff]  }
  0x95   :  { %2117 = vmatprep.subr.bf16.mxu0 %v4381_v40  ;;  %v4451_v40 = vld [vmem:[#allocation2 + $0x3e4] ss:$16 sps:$4 sm:$0xff]   ;;  %v343_v47 = vcombine.high %v325_v35, %v339_v36 }
  0x96   :  { %2326 = vmatpush1.bf16.msra.mxu1 %v4501_v10  ;;  %v4569_v10 = vld [vmem:[#allocation2 + $0x34c] ss:$16 sps:$4 sm:$0xff]  }
  0x97   :  { %2327 = vmatprep.subr.bf16.mxu1 %v4509_v12  ;;  %v4473_v12 = vld [vmem:[#allocation2 + $0x460] ss:$16 sps:$4 sm:$0xff]  }
  0x98   :  { %2118 = vmatpush1.bf16.msra.mxu0 %v4379_v44  ;;  %v198_v44 = vcombine.low %v5211_v20, %v5214_v24  ;;  %v4562_v20 = vld [vmem:[%s5600_s0 + $0x68] ss:$16 sps:$4 sm:$0xff]  }
  0x99   :  { %2119 = vmatprep.subr.bf16.mxu0 %v4384_v45  ;;  %2313 = vmatmul.mubr.bf16.gmra.mrb[4].mxu1 %v5230_v38  ;;  %v411_v38 = vrot.slane %v4543_v30, %v5146_v19  ;;  %v270_v45 = vcombine.low %v5217_v25, %v5220_v26  ;;  %v4531_v24 = vld [vmem:[#allocation2 + $0x2c8] ss:$16 sps:$4 sm:$0xff]   ;;  %v4539_v25 = vld [vmem:[#allocation2 + $0x2ec] ss:$16 sps:$4 sm:$0xff]   ;;  %v5286_v58 = vrot.slane %v4562_v20, %v5146_v19 }
  0x9a   :  { %2328 = vmatpush1.bf16.msra.mxu1 %v4507_v16  ;;  %2355 = vmatprep.mubr.bf16.mxu1 %v5232_v41  ;;  %v4525_v41 = vld [vmem:[#allocation2 + $0x2a8] ss:$16 sps:$4 sm:$0xff]   ;;  %v4575_v16 = vld [vmem:[#allocation2 + $0x36c] ss:$16 sps:$4 sm:$0xff]  }
  0x9b   :  { %2329 = vmatprep.subr.bf16.mxu1 %v4515_v21  ;;  %v5272_v26 = vpack.c.bf16 %v270_v45, %v198_v44  ;;  %v414_v62 = vcombine.low %v397_v37, %v411_v38  ;;  %v4487_v21 = vld [vmem:[#allocation2 + $0x4a4] ss:$16 sps:$4 sm:$0xff]   ;;  %v4587_v30 = vld [vmem:[#allocation2 + $0x3ac] ss:$16 sps:$4 sm:$0xff]   ;;  %v4603_v44 = vld [vmem:[#allocation2 + $0x408] ss:$16 sps:$4 sm:$0xff]  }
  0x9c   :  { %2120 = vmatpush1.bf16.msra.mxu0 %v4382_v48  ;;  %v415_v48 = vcombine.high %v397_v37, %v411_v38  ;;  %v4599_v37 = vld [vmem:[#allocation2 + $0x3ec] ss:$16 sps:$4 sm:$0xff]   ;;  %v4504_v38 = vld [vmem:[#allocation2 + $0x500] ss:$16 sps:$4 sm:$0xff]   ;;  %v4615_v20 = vld [vmem:[#allocation2 + $0x448] ss:$16 sps:$4 sm:$0xff]  }
  0x9d   :  { %2121 = vmatprep.subr.bf16.mxu0 %v4387_v49  ;;  %v4556_v49 = vld [vmem:[%s5600_s0 + $0x8] ss:$16 sps:$4 sm:$0xff]   ;;  %v4611_v45 = vld [vmem:[#allocation2 + $0x42c] ss:$16 sps:$4 sm:$0xff]  }
  0x9e   :  { %2330 = vmatpush1.bf16.msra.mxu1 %v4513_v17  ;;  %v5277_v55 = vrot.slane %v4556_v49, %v5146_v19  ;;  %v4581_v17 = vld [vmem:[#allocation2 + $0x38c] ss:$16 sps:$4 sm:$0xff]  }
  0x9f   :  { %2331 = vmatprep.subr.bf16.mxu1 %v4521_v23  ;;  %v4485_v23 = vld [vmem:[#allocation2 + $0x4a0] ss:$16 sps:$4 sm:$0xff]   ;;  %v4617_v49 = vld [vmem:[#allocation2 + $0x44c] ss:$16 sps:$4 sm:$0xff]  }
  0xa0   :  { %2122 = vmatpush1.bf16.msra.mxu0 %v4385_v52  ;;  %v5274_v52 = vpack.c.bf16 %v415_v48, %v343_v47  ;;  %v4524_v47 = vld [vmem:[#allocation2 + $0x564] ss:$16 sps:$4 sm:$0xff]   ;;  %v4609_v48 = vld [vmem:[#allocation2 + $0x428] ss:$16 sps:$4 sm:$0xff]  }
  0xa1   :  { %2123 = vmatprep.subr.bf16.mxu0 %v4390_v53  ;;  %v4455_v53 = vld [vmem:[#allocation2 + $0x400] ss:$16 sps:$4 sm:$0xff]  }
  0xa2   :  { %2332 = vmatpush1.bf16.msra.mxu1 %v4519_v33  ;;  %v4593_v33 = vld [vmem:[#allocation2 + $0x3cc] ss:$16 sps:$4 sm:$0xff]  }
  0xa3   :  { %2333 = vmatprep.subr.bf16.mxu1 %v4527_v34  ;;  %v4498_v34 = vld [vmem:[#allocation2 + $0x4e0] ss:$16 sps:$4 sm:$0xff]  }
  0xa4   :  { %2124 = vmatpush1.bf16.msra.mxu0 %v4388_v56  ;;  %v5280_v56 = vrot.slane %v4558_v50, %v5146_v19  ;;  %v4522_v50 = vld [vmem:[#allocation2 + $0x560] ss:$16 sps:$4 sm:$0xff]  }
  0xa5   :  { %2125 = vmatprep.subr.bf16.mxu0 %v4395_v57  ;;  %v5283_v57 = vrot.slane %v4560_v51, %v5146_v19  ;;  %v4530_v51 = vld [vmem:[#allocation2 + $0x584] ss:$16 sps:$4 sm:$0xff]  }
  0xa6   :  { %2334 = vmatpush1.bf16.msra.mxu1 %v4525_v41  ;;  %v4605_v41 = vld [vmem:[#allocation2 + $0x40c] ss:$16 sps:$4 sm:$0xff]  }
  0xa7   :  { %2335 = vmatprep.subr.bf16.mxu1 %v4533_v43  ;;  %v305_v2 = vcombine.high %v5283_v57, %v5286_v58  ;;  %v4518_v43 = vld [vmem:[#allocation2 + $0x544] ss:$16 sps:$4 sm:$0xff]  }
  0xa8   :  { %2126 = vmatpush1.bf16.msra.mxu0 %v4393_v60  ;;  %v4549_v60 = vld [vmem:[#allocation2 + $0x30c] ss:$16 sps:$4 sm:$0xff]  }
  0xa9   :  { %2127 = vmatprep.subr.bf16.mxu0 %v4401_v61  ;;  %v342_v61 = vcombine.low %v325_v35, %v339_v36  ;;  %v4506_v35 = vld [vmem:[#allocation2 + $0x504] ss:$16 sps:$4 sm:$0xff]   ;;  %v4591_v36 = vld [vmem:[#allocation2 + $0x3c8] ss:$16 sps:$4 sm:$0xff]  }
  0xaa   :  { %2336 = vmatpush1.bf16.msra.mxu1 %v4531_v24  ;;  %v4623_v24 = vld [vmem:[#allocation2 + $0x46c] ss:$16 sps:$4 sm:$0xff]  }
  0xab   :  { %2337 = vmatprep.subr.bf16.mxu1 %v4539_v25  ;;  %v4528_v25 = vld [vmem:[#allocation2 + $0x580] ss:$16 sps:$4 sm:$0xff]  }
  0xac   :  { %2128 = vmatpush1.bf16.msra.mxu0 %v4399_v0  ;;  %v4469_v0 = vld [vmem:[#allocation2 + $0x444] ss:$16 sps:$4 sm:$0xff]  }
  0xad   :  { %2129 = vmatprep.subr.bf16.mxu0 %v4407_v1  ;;  %v233_v1 = vcombine.high %v5277_v55, %v5280_v56 }
  0xae   :  { %2338 = vmatpush1.bf16.msra.mxu1 %v4537_v59  ;;  %v4647_v59 = vld [vmem:[%s5600_s0 + $0xa8] ss:$16 sps:$4 sm:$0xff]  }
  0xaf   :  { %2339 = vmatprep.subr.bf16.mxu1 %v4549_v60  ;;  %v4649_v60 = vld [vmem:[%s5600_s0 + $0xc8] ss:$16 sps:$4 sm:$0xff]  }
  0xb0   :  { %2130 = vmatpush1.bf16.msra.mxu0 %v4405_v4  ;;  %v4555_v4 = vld [vmem:[#allocation2 + $0x32c] ss:$16 sps:$4 sm:$0xff]  }
  0xb1   :  { %2131 = vmatprep.subr.bf16.mxu0 %v4413_v5  ;;  %v5294_v5 = vpack.c.bf16 %v414_v62, %v342_v61  ;;  %v4651_v61 = vld [vmem:[%s5600_s0 + $0xe8] ss:$16 sps:$4 sm:$0xff]   ;;  %v4534_v62 = vld [vmem:[#allocation2 + $0x5a0] ss:$16 sps:$4 sm:$0xff]  }
  0xb2   :  { %2340 = vmatpush1.bf16.msra.mxu1 %v4547_v3  ;;  %v368_v3 = vrot.slane %v4647_v59, %v5146_v19  ;;  %v4682_v59 = vld [vmem:[#allocation2 + $0x588] ss:$16 sps:$4 sm:$0xff]  }
  0xb3   :  { %2341 = vmatprep.subr.bf16.mxu1 %v4555_v4  ;;  %v426_v4 = vrot.slane %v4649_v60, %v5146_v19  ;;  %v4687_v60 = vld [vmem:[#allocation2 + $0x5ac] ss:$16 sps:$4 sm:$0xff]  }
  0xb4   :  { %2132 = vmatpush1.bf16.msra.mxu0 %v4411_v8  ;;  %v5296_v8 = vpack.c.bf16 %v305_v2, %v233_v1  ;;  %v4635_v1 = vld [vmem:[#allocation2 + $0x4ac] ss:$16 sps:$4 sm:$0xff]  }
  0xb5   :  { %2133 = vmatprep.subr.bf16.mxu0 %v4419_v9  ;;  %v4553_v9 = vld [vmem:[#allocation2 + $0x328] ss:$16 sps:$4 sm:$0xff]  }
  0xb6   :  { %2342 = vmatpush1.bf16.msra.mxu1 %v4553_v9  ;;  %v4550_v9 = vld [vmem:[#allocation2 + $0x5e0] ss:$16 sps:$4 sm:$0xff]  }
  0xb7   :  { %2343 = vmatprep.subr.bf16.mxu1 %v4569_v10  ;;  %v4641_v10 = vld [vmem:[#allocation2 + $0x4cc] ss:$16 sps:$4 sm:$0xff]  }
  0xb8   :  { %2134 = vmatpush1.bf16.msra.mxu0 %v4417_v13  ;;  %v4481_v13 = vld [vmem:[#allocation2 + $0x484] ss:$16 sps:$4 sm:$0xff]  }
  0xb9   :  { %2135 = vmatprep.subr.bf16.mxu0 %v4425_v14  ;;  %v4567_v14 = vld [vmem:[#allocation2 + $0x348] ss:$16 sps:$4 sm:$0xff]  }
  0xba   :  { %2344 = vmatpush1.bf16.msra.mxu1 %v4567_v14  ;;  %v4566_v14 = vld [vmem:[#allocation2 + $0x604] ss:$16 sps:$4 sm:$0xff]  }
  0xbb   :  { %2345 = vmatprep.subr.bf16.mxu1 %v4575_v16 }
  0xbc   :  { %2136 = vmatpush1.bf16.msra.mxu0 %v4423_v18  ;;  %v4479_v18 = vld [vmem:[#allocation2 + $0x480] ss:$16 sps:$4 sm:$0xff]  }
  0xbd   :  { %2137 = vmatprep.subr.bf16.mxu0 %v4431_v22  ;;  %v4573_v22 = vld [vmem:[#allocation2 + $0x368] ss:$16 sps:$4 sm:$0xff]  }
  0xbe   :  { %2346 = vmatpush1.bf16.msra.mxu1 %v4573_v22  ;;  %v4666_v22 = vld [vmem:[%s5600_s0 + $0x2c] ss:$16 sps:$4 sm:$0xff]  }
  0xbf   :  { %2347 = vmatprep.subr.bf16.mxu1 %v4581_v17  ;;  %v4667_v17 = vld [vmem:[%s5600_s0 + $0x4c] ss:$16 sps:$4 sm:$0xff]  }
  0xc0   :  { %2138 = vmatpush1.bf16.msra.mxu0 %v4429_v31  ;;  %v4500_v31 = vld [vmem:[#allocation2 + $0x4e4] ss:$16 sps:$4 sm:$0xff]  }
  0xc1   :  { %2139 = vmatprep.subr.bf16.mxu0 %v4445_v32  ;;  %v4585_v32 = vld [vmem:[#allocation2 + $0x3a8] ss:$16 sps:$4 sm:$0xff]  }
  0xc2   :  { %2348 = vmatpush1.bf16.msra.mxu1 %v4579_v28  ;;  %v4572_v28 = vld [vmem:[#allocation2 + $0x624] ss:$16 sps:$4 sm:$0xff]  }
  0xc3   :  { %2349 = vmatprep.subr.bf16.mxu1 %v4587_v30  ;;  %v5344_v30 = vrot.slane %v4666_v22, %v5146_v19  ;;  %v4630_v22 = vld [vmem:[#allocation2 + $0x760] ss:$16 sps:$4 sm:$0xff]  }
  0xc4   :  { %2140 = vmatpush1.bf16.msra.mxu0 %v4443_v39  ;;  %v4512_v39 = vld [vmem:[#allocation2 + $0x524] ss:$16 sps:$4 sm:$0xff]  }
  0xc5   :  { %2141 = vmatprep.subr.bf16.mxu0 %v4451_v40  ;;  %v4597_v40 = vld [vmem:[#allocation2 + $0x3e8] ss:$16 sps:$4 sm:$0xff]  }
  0xc6   :  { %2350 = vmatpush1.bf16.msra.mxu1 %v4585_v32 }
  0xc7   :  { %2351 = vmatprep.subr.bf16.mxu1 %v4593_v33  ;;  %v4653_v33 = vld [vmem:[#allocation2 + $0x4e8] ss:$16 sps:$4 sm:$0xff]  }
  0xc8   :  { %2142 = vmatpush1.bf16.msra.mxu0 %v4449_v42  ;;  %v4510_v42 = vld [vmem:[#allocation2 + $0x520] ss:$16 sps:$4 sm:$0xff]  }
  0xc9   :  { %2164 = vmatprep.subr.bf16.mxu0 %v4457_v46  ;;  %v4516_v46 = vld [vmem:[#allocation2 + $0x540] ss:$16 sps:$4 sm:$0xff]  }
  0xca   :  { %2352 = vmatpush1.bf16.msra.mxu1 %v4591_v36 }
  0xcb   :  { %2144 = vmatmul.mubr.bf16.vlgmr.msra.gmra.mrb[0].mxu0 %v5272_v26  ;;  %2353 = vmatprep.subr.bf16.mxu1 %v4599_v37  ;;  %v4570_v37 = vld [vmem:[#allocation2 + $0x620] ss:$16 sps:$4 sm:$0xff]  }
  0xcc   :  { %2165 = vmatpush1.bf16.msra.mxu0 %v4455_v53  ;;  %2153 = vmatprep.mubr.bf16.mxu0 %v5274_v52  ;;  %v4536_v53 = vld [vmem:[#allocation2 + $0x5a4] ss:$16 sps:$4 sm:$0xff]  }
  0xcd   :  { %2166 = vmatprep.subr.bf16.mxu0 %v4463_v54  ;;  %v4621_v54 = vld [vmem:[#allocation2 + $0x468] ss:$16 sps:$4 sm:$0xff]  }
  0xce   :  { %2354 = vmatpush1.bf16.msra.mxu1 %v4597_v40 }
  0xcf   :  { %2376 = vmatprep.subr.bf16.mxu1 %v4605_v41  ;;  %v4659_v41 = vld [vmem:[#allocation2 + $0x508] ss:$16 sps:$4 sm:$0xff]  }
  0xd0   :  { %2167 = vmatpush1.bf16.msra.mxu0 %v4461_v63  ;;  %v4546_v63 = vld [vmem:[#allocation2 + $0x5c4] ss:$16 sps:$4 sm:$0xff]  }
  0xd1   :  { %2168 = vmatprep.subr.bf16.mxu0 %v4469_v0  ;;  %2356 = vmatmul.mubr.bf16.vlgmr.msra.gmra.mrb[0].mxu1 %v5272_v26  ;;  %v4629_v26 = vld [vmem:[#allocation2 + $0x48c] ss:$16 sps:$4 sm:$0xff]   ;;  %v4627_v0 = vld [vmem:[#allocation2 + $0x488] ss:$16 sps:$4 sm:$0xff]  }
  0xd2   :  { %2377 = vmatpush1.bf16.msra.mxu1 %v4603_v44  ;;  %2365 = vmatprep.mubr.bf16.mxu1 %v5274_v52  ;;  %v4645_v52 = vld [vmem:[%s5600_s0 + $0x88] ss:$16 sps:$4 sm:$0xff]   ;;  %v4576_v44 = vld [vmem:[#allocation2 + $0x640] ss:$16 sps:$4 sm:$0xff]  }
  0xd3   :  { %2154 = vmatmul.mubr.bf16.gmra.mrb[4].mxu0 %v5294_v5  ;;  %2378 = vmatprep.subr.bf16.mxu1 %v4611_v45  ;;  %v354_v2 = vrot.slane %v4645_v52, %v5146_v19  ;;  %v4584_v45 = vld [vmem:[#allocation2 + $0x664] ss:$16 sps:$4 sm:$0xff]  }
  0xd4   :  { %2169 = vmatpush1.bf16.msra.mxu0 %v4467_v6  ;;  %2196 = vmatprep.mubr.bf16.mxu0 %v5296_v8  ;;  %v4544_v6 = vld [vmem:[#allocation2 + $0x5c0] ss:$16 sps:$4 sm:$0xff]   ;;  %v4602_v52 = vld [vmem:[#allocation2 + $0x6c4] ss:$16 sps:$4 sm:$0xff]  }
  0xd5   :  { %2170 = vmatprep.subr.bf16.mxu0 %v4475_v7  ;;  %v4552_v7 = vld [vmem:[#allocation2 + $0x5e4] ss:$16 sps:$4 sm:$0xff]   ;;  %v377_v16 = vcombine.high %v354_v2, %v368_v3 }
  0xd6   :  { %2379 = vmatpush1.bf16.msra.mxu1 %v4609_v48  ;;  %v4674_v48 = vld [vmem:[#allocation2 + $0x54c] ss:$16 sps:$4 sm:$0xff]  }
  0xd7   :  { %2380 = vmatprep.subr.bf16.mxu1 %v4617_v49  ;;  %v4582_v49 = vld [vmem:[#allocation2 + $0x660] ss:$16 sps:$4 sm:$0xff]  }
  0xd8   :  { %2171 = vmatpush1.bf16.msra.mxu0 %v4473_v12  ;;  %v232_v12 = vcombine.low %v5277_v55, %v5280_v56  ;;  %v4668_v55 = vld [vmem:[%s5600_s0 + $0x6c] ss:$16 sps:$4 sm:$0xff]   ;;  %v4639_v56 = vld [vmem:[#allocation2 + $0x4c8] ss:$16 sps:$4 sm:$0xff]  }
  0xd9   :  { %2172 = vmatprep.subr.bf16.mxu0 %v4481_v13  ;;  %2366 = vmatmul.mubr.bf16.gmra.mrb[4].mxu1 %v5294_v5  ;;  %v440_v5 = vrot.slane %v4651_v61, %v5146_v19  ;;  %v304_v13 = vcombine.low %v5283_v57, %v5286_v58  ;;  %v4655_v57 = vld [vmem:[#allocation2 + $0x4ec] ss:$16 sps:$4 sm:$0xff]   ;;  %v5350_v32 = vrot.slane %v4668_v55, %v5146_v19  ;;  %v4600_v61 = vld [vmem:[#allocation2 + $0x6c0] ss:$16 sps:$4 sm:$0xff]   ;;  %v4700_v55 = vld [vmem:[#allocation2 + $0x648] ss:$16 sps:$4 sm:$0xff]  }
  0xda   :  { %2381 = vmatpush1.bf16.msra.mxu1 %v4615_v20  ;;  %2408 = vmatprep.mubr.bf16.mxu1 %v5296_v8  ;;  %v4633_v8 = vld [vmem:[#allocation2 + $0x4a8] ss:$16 sps:$4 sm:$0xff]   ;;  %v4681_v20 = vld [vmem:[#allocation2 + $0x56c] ss:$16 sps:$4 sm:$0xff]  }
  0xdb   :  { %2382 = vmatprep.subr.bf16.mxu1 %v4623_v24  ;;  %v5336_v58 = vpack.c.bf16 %v304_v13, %v232_v12  ;;  %v448_v36 = vcombine.low %v426_v4, %v440_v5  ;;  %v4588_v24 = vld [vmem:[#allocation2 + $0x680] ss:$16 sps:$4 sm:$0xff]   ;;  %v4694_v12 = vld [vmem:[#allocation2 + $0x608] ss:$16 sps:$4 sm:$0xff]   ;;  %v4699_v13 = vld [vmem:[#allocation2 + $0x62c] ss:$16 sps:$4 sm:$0xff]  }
  0xdc   :  { %2173 = vmatpush1.bf16.msra.mxu0 %v4479_v18  ;;  %v449_v18 = vcombine.high %v426_v4, %v440_v5  ;;  %v4693_v4 = vld [vmem:[#allocation2 + $0x5ec] ss:$16 sps:$4 sm:$0xff]   ;;  %v4612_v5 = vld [vmem:[#allocation2 + $0x700] ss:$16 sps:$4 sm:$0xff]  }
  0xdd   :  { %2174 = vmatprep.subr.bf16.mxu0 %v4487_v21  ;;  %v4665_v21 = vld [vmem:[%s5600_s0 + $0xc] ss:$16 sps:$4 sm:$0xff]  }
  0xde   :  { %2383 = vmatpush1.bf16.msra.mxu1 %v4621_v54  ;;  %v4684_v54 = vld [vmem:[#allocation2 + $0x58c] ss:$16 sps:$4 sm:$0xff]  }
  0xdf   :  { %2384 = vmatprep.subr.bf16.mxu1 %v4629_v26  ;;  %v4594_v26 = vld [vmem:[#allocation2 + $0x6a0] ss:$16 sps:$4 sm:$0xff]  }
  0xe0   :  { %2175 = vmatpush1.bf16.msra.mxu0 %v4485_v23  ;;  %v5338_v23 = vpack.c.bf16 %v449_v18, %v377_v16  ;;  %v4632_v16 = vld [vmem:[#allocation2 + $0x764] ss:$16 sps:$4 sm:$0xff]   ;;  %v4697_v18 = vld [vmem:[#allocation2 + $0x628] ss:$16 sps:$4 sm:$0xff]  }
  0xe1   :  { %2176 = vmatprep.subr.bf16.mxu0 %v4493_v27  ;;  %v4564_v27 = vld [vmem:[#allocation2 + $0x600] ss:$16 sps:$4 sm:$0xff]  }
  0xe2   :  { %2385 = vmatpush1.bf16.msra.mxu1 %v4627_v0  ;;  %v4690_v0 = vld [vmem:[#allocation2 + $0x5cc] ss:$16 sps:$4 sm:$0xff]  }
  0xe3   :  { %2386 = vmatprep.subr.bf16.mxu1 %v4635_v1  ;;  %v4606_v1 = vld [vmem:[#allocation2 + $0x6e0] ss:$16 sps:$4 sm:$0xff]  }
  0xe4   :  { %2177 = vmatpush1.bf16.msra.mxu0 %v4491_v29  ;;  %v5341_v29 = vrot.slane %v4665_v21, %v5146_v19  ;;  %v4702_v21 = vld [vmem:[#allocation2 + $0x64c] ss:$16 sps:$4 sm:$0xff]  }
  0xe5   :  { %2178 = vmatprep.subr.bf16.mxu0 %v4500_v31  ;;  %v5347_v31 = vrot.slane %v4667_v17, %v5146_v19  ;;  %v4638_v17 = vld [vmem:[#allocation2 + $0x784] ss:$16 sps:$4 sm:$0xff]  }
  0xe6   :  { %2387 = vmatpush1.bf16.msra.mxu1 %v4633_v8  ;;  %v4696_v8 = vld [vmem:[#allocation2 + $0x60c] ss:$16 sps:$4 sm:$0xff]  }
  0xe7   :  { %2388 = vmatprep.subr.bf16.mxu1 %v4641_v10  ;;  %v307_v40 = vcombine.high %v5347_v31, %v5350_v32  ;;  %v4626_v10 = vld [vmem:[#allocation2 + $0x744] ss:$16 sps:$4 sm:$0xff]  }
  0xe8   :  { %2179 = vmatpush1.bf16.msra.mxu0 %v4498_v34  ;;  %v4661_v34 = vld [vmem:[#allocation2 + $0x50c] ss:$16 sps:$4 sm:$0xff]  }
  0xe9   :  { %2180 = vmatprep.subr.bf16.mxu0 %v4506_v35  ;;  %v376_v35 = vcombine.low %v354_v2, %v368_v3  ;;  %v4614_v2 = vld [vmem:[#allocation2 + $0x704] ss:$16 sps:$4 sm:$0xff]   ;;  %v4688_v3 = vld [vmem:[#allocation2 + $0x5c8] ss:$16 sps:$4 sm:$0xff]  }
  0xea   :  { %2389 = vmatpush1.bf16.msra.mxu1 %v4639_v56  ;;  %v4705_v56 = vld [vmem:[#allocation2 + $0x66c] ss:$16 sps:$4 sm:$0xff]  }
  0xeb   :  { %2390 = vmatprep.subr.bf16.mxu1 %v4655_v57  ;;  %v4636_v57 = vld [vmem:[#allocation2 + $0x780] ss:$16 sps:$4 sm:$0xff]  }
  0xec   :  { %2181 = vmatpush1.bf16.msra.mxu0 %v4504_v38  ;;  %v4578_v38 = vld [vmem:[#allocation2 + $0x644] ss:$16 sps:$4 sm:$0xff]  }
  0xed   :  { %2182 = vmatprep.subr.bf16.mxu0 %v4512_v39  ;;  %v235_v39 = vcombine.high %v5341_v29, %v5344_v30 }
  0xee   :  { %2391 = vmatpush1.bf16.msra.mxu1 %v4653_v33  ;;  %v4708_v33 = vld [vmem:[#allocation2 + $0x68c] ss:$16 sps:$4 sm:$0xff]  }
  0xef   :  { %2392 = vmatprep.subr.bf16.mxu1 %v4661_v34  ;;  %v4676_v34 = vld [vmem:[%s5600_s0 + $0xac] ss:$16 sps:$4 sm:$0xff]  }
  0xf0   :  { %2183 = vmatpush1.bf16.msra.mxu0 %v4510_v42  ;;  %v4671_v42 = vld [vmem:[#allocation2 + $0x52c] ss:$16 sps:$4 sm:$0xff]  }
  0xf1   :  { %2184 = vmatprep.subr.bf16.mxu0 %v4518_v43  ;;  %v5358_v43 = vpack.c.bf16 %v448_v36, %v376_v35  ;;  %v4677_v35 = vld [vmem:[%s5600_s0 + $0xcc] ss:$16 sps:$4 sm:$0xff]  }
  0xf2   :  { %2393 = vmatpush1.bf16.msra.mxu1 %v4659_v41  ;;  %v4678_v36 = vld [vmem:[%s5600_s0 + $0xec] ss:$16 sps:$4 sm:$0xff]  }
  0xf3   :  { %2394 = vmatprep.subr.bf16.mxu1 %v4671_v42  ;;  %v375_v42 = vrot.slane %v4676_v34, %v5146_v19  ;;  %v4769_v34 = vld [vmem:[#allocation4 + $0x90] ss:$8 sps:$4 sm:$0xff]  }
  0xf4   :  { %2185 = vmatpush1.bf16.msra.mxu0 %v4516_v46  ;;  %v5360_v46 = vpack.c.bf16 %v307_v40, %v235_v39  ;;  %v4711_v39 = vld [vmem:[#allocation2 + $0x6ac] ss:$16 sps:$4 sm:$0xff]   ;;  %v4656_v40 = vld [vmem:[#allocation2 + $0x7c0] ss:$16 sps:$4 sm:$0xff]  }
  0xf5   :  { %2186 = vmatprep.subr.bf16.mxu0 %v4524_v47  ;;  %v4669_v47 = vld [vmem:[#allocation2 + $0x528] ss:$16 sps:$4 sm:$0xff]  }
  0xf6   :  { %2395 = vmatpush1.bf16.msra.mxu1 %v4669_v47  ;;  %v4714_v47 = vld [vmem:[#allocation2 + $0x6cc] ss:$16 sps:$4 sm:$0xff]  }
  0xf7   :  { %2396 = vmatprep.subr.bf16.mxu1 %v4674_v48  ;;  %v234_v48 = vcombine.low %v5341_v29, %v5344_v30  ;;  %v4715_v29 = vld [vmem:[#allocation2 + $0x6e8] ss:$16 sps:$4 sm:$0xff]   ;;  %v4747_v30 = vld [vmem:[#allocation4 + $0x14] ss:$8 sps:$4 sm:$0xff]  }
  0xf8   :  { %2187 = vmatpush1.bf16.msra.mxu0 %v4522_v50  ;;  %v4590_v50 = vld [vmem:[#allocation2 + $0x684] ss:$16 sps:$4 sm:$0xff]  }
  0xf9   :  { %2188 = vmatprep.subr.bf16.mxu0 %v4530_v51  ;;  %v4672_v51 = vld [vmem:[#allocation2 + $0x548] ss:$16 sps:$4 sm:$0xff]  }
  0xfa   :  { %2397 = vmatpush1.bf16.msra.mxu1 %v4672_v51 }
  0xfb   :  { %2398 = vmatprep.subr.bf16.mxu1 %v4681_v20 }
  0xfc   :  { %2189 = vmatpush1.bf16.msra.mxu0 %v4528_v25  ;;  %v4596_v25 = vld [vmem:[#allocation2 + $0x6a4] ss:$16 sps:$4 sm:$0xff]  }
  0xfd   :  { %2190 = vmatprep.subr.bf16.mxu0 %v4536_v53  ;;  %v4679_v53 = vld [vmem:[#allocation2 + $0x568] ss:$16 sps:$4 sm:$0xff]  }
  0xfe   :  { %2399 = vmatpush1.bf16.msra.mxu1 %v4679_v53 }
  0xff   :  { %2400 = vmatprep.subr.bf16.mxu1 %v4684_v54 }
 0x100   :  { %2191 = vmatpush1.bf16.msra.mxu0 %v4534_v62  ;;  %v4608_v62 = vld [vmem:[#allocation2 + $0x6e4] ss:$16 sps:$4 sm:$0xff]  }
 0x101   :  { %2192 = vmatprep.subr.bf16.mxu0 %v4546_v63  ;;  %v4685_v63 = vld [vmem:[#allocation2 + $0x5a8] ss:$16 sps:$4 sm:$0xff]  }
 0x102   :  { %2401 = vmatpush1.bf16.msra.mxu1 %v4682_v59  ;;  %v4745_v59 = vld [vmem:[#allocation4 + $0x10] ss:$8 sps:$4 sm:$0xff]  }
 0x103   :  { %2402 = vmatprep.subr.bf16.mxu1 %v4687_v60  ;;  %v4718_v60 = vld [vmem:[#allocation2 + $0x708] ss:$16 sps:$4 sm:$0xff]  }
 0x104   :  { %2193 = vmatpush1.bf16.msra.mxu0 %v4544_v6  ;;  %v4620_v6 = vld [vmem:[#allocation2 + $0x724] ss:$16 sps:$4 sm:$0xff]  }
 0x105   :  { %2194 = vmatprep.subr.bf16.mxu0 %v4552_v7  ;;  %v4691_v7 = vld [vmem:[#allocation2 + $0x5e8] ss:$16 sps:$4 sm:$0xff]  }
 0x106   :  { %2403 = vmatpush1.bf16.msra.mxu1 %v4685_v63 }
 0x107   :  { %2404 = vmatprep.subr.bf16.mxu1 %v4690_v0  ;;  %v4748_v0 = vld [vmem:[#allocation4 + $0x20] ss:$8 sps:$4 sm:$0xff]  }
 0x108   :  { %2195 = vmatpush1.bf16.msra.mxu0 %v4550_v9  ;;  %v4618_v9 = vld [vmem:[#allocation2 + $0x720] ss:$16 sps:$4 sm:$0xff]  }
 0x109   :  { %2217 = vmatprep.subr.bf16.mxu0 %v4566_v14  ;;  %v4624_v14 = vld [vmem:[#allocation2 + $0x740] ss:$16 sps:$4 sm:$0xff]  }
 0x10a   :  { %2405 = vmatpush1.bf16.msra.mxu1 %v4688_v3  ;;  %v4726_v3 = vld [vmem:[#allocation2 + $0x74c] ss:$16 sps:$4 sm:$0xff]  }
 0x10b   :  { %2197 = vmatmul.mubr.bf16.vlgmr.msra.gmra.mrb[0].mxu0 %v5336_v58  ;;  %2406 = vmatprep.subr.bf16.mxu1 %v4693_v4  ;;  %v4751_v4 = vld [vmem:[#allocation4 + $0x30] ss:$8 sps:$4 sm:$0xff]  }
 0x10c   :  { %2218 = vmatpush1.bf16.msra.mxu0 %v4564_v27  ;;  %2206 = vmatprep.mubr.bf16.mxu0 %v5338_v23  ;;  %v4644_v27 = vld [vmem:[#allocation2 + $0x7a4] ss:$16 sps:$4 sm:$0xff]  }
 0x10d   :  { %2219 = vmatprep.subr.bf16.mxu0 %v4572_v28  ;;  %v4703_v28 = vld [vmem:[#allocation2 + $0x668] ss:$16 sps:$4 sm:$0xff]  }
 0x10e   :  { %2407 = vmatpush1.bf16.msra.mxu1 %v4691_v7  ;;  %v4729_v7 = vld [vmem:[#allocation2 + $0x76c] ss:$16 sps:$4 sm:$0xff]  }
 0x10f   :  { %2429 = vmatprep.subr.bf16.mxu1 %v4696_v8  ;;  %v4754_v8 = vld [vmem:[#allocation4 + $0x40] ss:$8 sps:$4 sm:$0xff]  }
 0x110   :  { %2220 = vmatpush1.bf16.msra.mxu0 %v4570_v37  ;;  %v4658_v37 = vld [vmem:[#allocation2 + $0x7c4] ss:$16 sps:$4 sm:$0xff]  }
 0x111   :  { %2221 = vmatprep.subr.bf16.mxu0 %v4578_v38  ;;  %2409 = vmatmul.mubr.bf16.vlgmr.msra.gmra.mrb[0].mxu1 %v5336_v58  ;;  %v4642_v58 = vld [vmem:[#allocation2 + $0x7a0] ss:$16 sps:$4 sm:$0xff]   ;;  %v4706_v38 = vld [vmem:[#allocation2 + $0x688] ss:$16 sps:$4 sm:$0xff]  }
 0x112   :  { %2430 = vmatpush1.bf16.msra.mxu1 %v4694_v12  ;;  %2418 = vmatprep.mubr.bf16.mxu1 %v5338_v23  ;;  %v4675_v23 = vld [vmem:[%s5600_s0 + $0x8c] ss:$16 sps:$4 sm:$0xff]  }
 0x113   :  { %2207 = vmatmul.mubr.bf16.gmra.mrb[4].mxu0 %v5358_v43  ;;  %2431 = vmatprep.subr.bf16.mxu1 %v4699_v13  ;;  %v361_v41 = vrot.slane %v4675_v23, %v5146_v19  ;;  %v4732_v12 = vld [vmem:[#allocation2 + $0x78c] ss:$16 sps:$4 sm:$0xff]   ;;  %v4757_v13 = vld [vmem:[#allocation4 + $0x50] ss:$8 sps:$4 sm:$0xff]  }
 0x114   :  { %2222 = vmatpush1.bf16.msra.mxu0 %v4576_v44  ;;  %2249 = vmatprep.mubr.bf16.mxu0 %v5360_v46  ;;  %v447_v44 = vrot.slane %v4678_v36, %v5146_v19  ;;  %v4771_v23 = vld [vmem:[#allocation4 + $0x94] ss:$8 sps:$4 sm:$0xff]   ;;  %v4772_v36 = vld [vmem:[#allocation4 + $0xa0] ss:$8 sps:$4 sm:$0xff]  }
 0x115   :  { %2223 = vmatprep.subr.bf16.mxu0 %v4584_v45  ;;  %v4664_v45 = vld [vmem:[#allocation2 + $0x7e4] ss:$16 sps:$4 sm:$0xff]   ;;  %v379_v51 = vcombine.high %v361_v41, %v375_v42 }
 0x116   :  { %2432 = vmatpush1.bf16.msra.mxu1 %v4697_v18  ;;  %v4735_v18 = vld [vmem:[#allocation2 + $0x7ac] ss:$16 sps:$4 sm:$0xff]  }
 0x117   :  { %2433 = vmatprep.subr.bf16.mxu1 %v4702_v21  ;;  %v4760_v21 = vld [vmem:[#allocation4 + $0x60] ss:$8 sps:$4 sm:$0xff]  }
 0x118   :  { %2224 = vmatpush1.bf16.msra.mxu0 %v4582_v49  ;;  %v306_v49 = vcombine.low %v5347_v31, %v5350_v32  ;;  %v4720_v31 = vld [vmem:[#allocation2 + $0x70c] ss:$16 sps:$4 sm:$0xff]   ;;  %v378_v32 = vcombine.low %v361_v41, %v375_v42  ;;  %v4781_v42 = vld [vmem:[#allocation4 + $0xd0] ss:$8 sps:$4 sm:$0xff]  }
 0x119   :  { %2225 = vmatprep.subr.bf16.mxu0 %v4590_v50  ;;  %2419 = vmatmul.mubr.bf16.gmra.mrb[4].mxu1 %v5358_v43  ;;  %v433_v43 = vrot.slane %v4677_v35, %v5146_v19  ;;  %v4662_v50 = vld [vmem:[#allocation2 + $0x7e0] ss:$16 sps:$4 sm:$0xff]   ;;  %v4744_v19 = vld [vmem:[#allocation4 + $0x4] ss:$8 sps:$4 sm:$0xff]   ;;  %v4783_v41 = vld [vmem:[#allocation4 + $0xd4] ss:$8 sps:$4 sm:$0xff]  }
 0x11a   :  { %2434 = vmatpush1.bf16.msra.mxu1 %v4700_v55  ;;  %2461 = vmatprep.mubr.bf16.mxu1 %v5360_v46  ;;  %v4709_v46 = vld [vmem:[#allocation2 + $0x6a8] ss:$16 sps:$4 sm:$0xff]   ;;  %v5388_v53 = vpack.c.bf16 %v306_v49, %v234_v48  ;;  %v4738_v55 = vld [vmem:[#allocation2 + $0x7cc] ss:$16 sps:$4 sm:$0xff]   ;;  %v4791_v48 = vld [vmem:[%s5605_s5] sm:$0xff]  }
 0x11b   :  { %2435 = vmatprep.subr.bf16.mxu1 %v4705_v56  ;;  %v451_v20 = vcombine.high %v433_v43, %v447_v44  ;;  %v4763_v56 = vld [vmem:[#allocation4 + $0x70] ss:$8 sps:$4 sm:$0xff]   ;;  %v4774_v35 = vld [vmem:[#allocation4 + $0xa4] ss:$8 sps:$4 sm:$0xff]  }
 0x11c   :  { %2226 = vmatpush1.bf16.msra.mxu0 %v4588_v24  ;;  %v4712_v24 = vld [vmem:[#allocation2 + $0x6c8] ss:$16 sps:$4 sm:$0xff]  }
 0x11d   :  { %2227 = vmatprep.subr.bf16.mxu0 %v4596_v25  ;;  %v4717_v25 = vld [vmem:[#allocation2 + $0x6ec] ss:$16 sps:$4 sm:$0xff]   ;;  %v5390_v54 = vpack.c.bf16 %v451_v20, %v379_v51  ;;  %v4794_v51 = vld [vmem:[%s5605_s5 + $0x50] sm:$0xff]  }
 0x11e   :  { %2436 = vmatpush1.bf16.msra.mxu1 %v4703_v28  ;;  %v4741_v28 = vld [vmem:[#allocation2 + $0x7ec] ss:$16 sps:$4 sm:$0xff]   ;;  %v4795_v20 = vld [vmem:[%s5605_s5 + $0x10] sm:$0xff]  }
 0x11f   :  { %2437 = vmatprep.subr.bf16.mxu1 %v4708_v33  ;;  %v4766_v33 = vld [vmem:[#allocation4 + $0x80] ss:$8 sps:$4 sm:$0xff]  }
 0x120   :  { %2228 = vmatpush1.bf16.msra.mxu0 %v4594_v26  ;;  %v4742_v26 = vld [vmem:[#allocation4] ss:$8 sps:$4 sm:$0xff]  }
 0x121   :  { %2229 = vmatprep.subr.bf16.mxu0 %v4602_v52  ;;  %v450_v52 = vcombine.low %v433_v43, %v447_v44  ;;  %v4786_v43 = vld [vmem:[#allocation4 + $0xe4] ss:$8 sps:$4 sm:$0xff]   ;;  %v4784_v44 = vld [vmem:[#allocation4 + $0xe0] ss:$8 sps:$4 sm:$0xff]  }
 0x122   :  { %2438 = vmatpush1.bf16.msra.mxu1 %v4706_v38  ;;  %v4775_v38 = vld [vmem:[#allocation4 + $0xb0] ss:$8 sps:$4 sm:$0xff]   ;;  %v4792_v49 = vld [vmem:[%s5605_s5 + $0x48] sm:$0xff]  }
 0x123   :  { %2439 = vmatprep.subr.bf16.mxu1 %v4711_v39  ;;  %v5394_v63 = vpack.c.bf16 %v450_v52, %v378_v32  ;;  %v4780_v39 = vld [vmem:[#allocation4 + $0xc4] ss:$8 sps:$4 sm:$0xff]  }
 0x124   :  { %2230 = vmatpush1.bf16.msra.mxu0 %v4600_v61  ;;  %v4750_v61 = vld [vmem:[#allocation4 + $0x24] ss:$8 sps:$4 sm:$0xff]  }
 0x125   :  { %2231 = vmatprep.subr.bf16.mxu0 %v4608_v62  ;;  %v4723_v62 = vld [vmem:[#allocation2 + $0x72c] ss:$16 sps:$4 sm:$0xff]  }
 0x126   :  { %2440 = vmatpush1.bf16.msra.mxu1 %v4709_v46  ;;  %v4787_v46 = vld [vmem:[#allocation4 + $0xf0] ss:$8 sps:$4 sm:$0xff]  }
 0x127   :  { %2441 = vmatprep.subr.bf16.mxu1 %v4714_v47  ;;  %v4790_v47 = vld [vmem:[%s5605_s5 + $0x40] sm:$0xff]  }
 0x128   :  { %2232 = vmatpush1.bf16.msra.mxu0 %v4606_v1  ;;  %v4721_v1 = vld [vmem:[#allocation2 + $0x728] ss:$16 sps:$4 sm:$0xff]  }
 0x129   :  { %2233 = vmatprep.subr.bf16.mxu0 %v4614_v2  ;;  %v4753_v2 = vld [vmem:[#allocation4 + $0x34] ss:$8 sps:$4 sm:$0xff]  }
 0x12a   :  { %2442 = vmatpush1.bf16.msra.mxu1 %v4712_v24  ;;  %v4796_v24 = vld [vmem:[%s5605_s5 + $0x58] sm:$0xff]  }
 0x12b   :  { %2443 = vmatprep.subr.bf16.mxu1 %v4717_v25  ;;  %v4798_v25 = vld [vmem:[%s5605_s5 + $0x60] sm:$0xff]  }
 0x12c   :  { %2234 = vmatpush1.bf16.msra.mxu0 %v4612_v5  ;;  %v4724_v5 = vld [vmem:[#allocation2 + $0x748] ss:$16 sps:$4 sm:$0xff]  }
 0x12d   :  { %2235 = vmatprep.subr.bf16.mxu0 %v4620_v6  ;;  %v4756_v6 = vld [vmem:[#allocation4 + $0x44] ss:$8 sps:$4 sm:$0xff]  }
 0x12e   :  { %2444 = vmatpush1.bf16.msra.mxu1 %v4715_v29  ;;  %v5437_v29 = vsub.s32 0, %v5143_v15 }
 0x12f   :  { %2445 = vmatprep.subr.bf16.mxu1 %v4720_v31  ;;  %v5443_v31 = vsub.s32 1, %v5143_v15 }
 0x130   :  { %2236 = vmatpush1.bf16.msra.mxu0 %v4618_v9  ;;  %v4727_v9 = vld [vmem:[#allocation2 + $0x768] ss:$16 sps:$4 sm:$0xff]  }
 0x131   :  { %2237 = vmatprep.subr.bf16.mxu0 %v4626_v10  ;;  %v4759_v10 = vld [vmem:[#allocation4 + $0x54] ss:$8 sps:$4 sm:$0xff]  }
 0x132   :  { %2446 = vmatpush1.bf16.msra.mxu1 %v4718_v60 }
 0x133   :  { %2447 = vmatprep.subr.bf16.mxu1 %v4723_v62 }
 0x134   :  { %2238 = vmatpush1.bf16.msra.mxu0 %v4624_v14  ;;  %v4730_v14 = vld [vmem:[#allocation2 + $0x788] ss:$16 sps:$4 sm:$0xff]  }
 0x135   :  { %2239 = vmatprep.subr.bf16.mxu0 %v4632_v16  ;;  %v4762_v16 = vld [vmem:[#allocation4 + $0x64] ss:$8 sps:$4 sm:$0xff]  }
 0x136   :  { %2448 = vmatpush1.bf16.msra.mxu1 %v4721_v1 }
 0x137   :  { %2449 = vmatprep.subr.bf16.mxu1 %v4726_v3 }
 0x138   :  { %2240 = vmatpush1.bf16.msra.mxu0 %v4630_v22  ;;  %v4733_v22 = vld [vmem:[#allocation2 + $0x7a8] ss:$16 sps:$4 sm:$0xff]  }
 0x139   :  { %2241 = vmatprep.subr.bf16.mxu0 %v4638_v17  ;;  %v4765_v17 = vld [vmem:[#allocation4 + $0x74] ss:$8 sps:$4 sm:$0xff]  }
 0x13a   :  { %2450 = vmatpush1.bf16.msra.mxu1 %v4724_v5 }
 0x13b   :  { %2451 = vmatprep.subr.bf16.mxu1 %v4729_v7 }
 0x13c   :  { %2242 = vmatpush1.bf16.msra.mxu0 %v4636_v57  ;;  %v4736_v57 = vld [vmem:[#allocation2 + $0x7c8] ss:$16 sps:$4 sm:$0xff]  }
 0x13d   :  { %2243 = vmatprep.subr.bf16.mxu0 %v4644_v27  ;;  %v4768_v27 = vld [vmem:[#allocation4 + $0x84] ss:$8 sps:$4 sm:$0xff]  }
 0x13e   :  { %2452 = vmatpush1.bf16.msra.mxu1 %v4727_v9 }
 0x13f   :  { %2453 = vmatprep.subr.bf16.mxu1 %v4732_v12 }
 0x140   :  { %2244 = vmatpush1.bf16.msra.mxu0 %v4642_v58  ;;  %v4739_v58 = vld [vmem:[#allocation2 + $0x7e8] ss:$16 sps:$4 sm:$0xff]  }
 0x141   :  { %2245 = vmatprep.subr.bf16.mxu0 %v4658_v37  ;;  %v4777_v37 = vld [vmem:[#allocation4 + $0xb4] ss:$8 sps:$4 sm:$0xff]  }
 0x142   :  { %2454 = vmatpush1.bf16.msra.mxu1 %v4730_v14 }
 0x143   :  { %2455 = vmatprep.subr.bf16.mxu1 %v4735_v18 }
 0x144   :  { %2246 = vmatpush1.bf16.msra.mxu0 %v4656_v40  ;;  %v4778_v40 = vld [vmem:[#allocation4 + $0xc0] ss:$8 sps:$4 sm:$0xff]  }
 0x145   :  { %2247 = vmatprep.subr.bf16.mxu0 %v4664_v45  ;;  %v4789_v45 = vld [vmem:[#allocation4 + $0xf4] ss:$8 sps:$4 sm:$0xff]  }
 0x146   :  { %2456 = vmatpush1.bf16.msra.mxu1 %v4733_v22 }
 0x147   :  { %2457 = vmatprep.subr.bf16.mxu1 %v4738_v55 }
 0x148   :  { %2248 = vmatpush1.bf16.msra.mxu0 %v4662_v50  ;;  %v4793_v50 = vld [vmem:[%s5605_s5 + $0x8] sm:$0xff]  }
 0x149   :  { %2710 = vmatprep.subr.bf16.mxu0 %v4744_v19  ;;  %v4797_v19 = vld [vmem:[%s5605_s5 + $0x18] sm:$0xff]  }
 0x14a   :  { %2458 = vmatpush1.bf16.msra.mxu1 %v4736_v57 }
 0x14b   :  { %2250 = vmatmul.mubr.bf16.vlgmr.msra.gmra.mrb[0].mxu0 %v5388_v53  ;;  %2459 = vmatprep.subr.bf16.mxu1 %v4741_v28  ;;  %v768_v28 = vsub.s32 2, %v5143_v15 }
 0x14c   :  { %2259 = vmatprep.mubr.bf16.mxu0 %v5390_v54  ;;  %2711 = vmatpush1.bf16.msra.mxu0 %v4742_v26  ;;  %v4801_v26 = vld [vmem:[%s5605_s5 + $0x28] sm:$0xff]  }
 0x14d   :  { %2712 = vmatprep.subr.bf16.mxu0 %v4747_v30  ;;  %v756_v30 = vld [vmem:[%s5602_s2] sm:$0xf] }
 0x14e   :  { %2460 = vmatpush1.bf16.msra.mxu1 %v4739_v58  ;;  %v761_v32 = vrot.slane %v756_v30, %v5437_v29  ;;  %v765_v52 = vrot.slane %v756_v30, %v5443_v31  ;;  %v769_v58 = vrot.slane %v756_v30, %v768_v28 }
 0x14f   :  { %4173 = vmatprep.subr.bf16.mxu1 %v4790_v47 }
 0x150   :  { %2713 = vmatpush1.bf16.msra.mxu0 %v4745_v59 }
 0x151   :  { %2714 = vmatprep.subr.bf16.mxu0 %v4750_v61  ;;  %2462 = vmatmul.mubr.bf16.vlgmr.msra.gmra.mrb[0].mxu1 %v5388_v53  ;;  %v4799_v53 = vld [vmem:[%s5605_s5 + $0x20] sm:$0xff]  }
 0x152   :  { %2471 = vmatprep.mubr.bf16.mxu1 %v5390_v54  ;;  %4174 = vmatpush3.bf16.msra.mxu1 %v4791_v48  ;;  %v4800_v54 = vld [vmem:[%s5605_s5 + $0x68] sm:$0xff]  }
 0x153   :  { %2260 = vmatmul.mubr.bf16.gmra.mrb[4].mxu0 %v5394_v63  ;;  %4175 = vmatprep.subr.bf16.mxu1 %v4792_v49 }
 0x154   :  { %2715 = vmatpush1.bf16.msra.mxu0 %v4748_v0 }
 0x155   :  { %2716 = vmatprep.subr.bf16.mxu0 %v4753_v2 }
 0x156   :  { %4176 = vmatpush3.bf16.msra.mxu1 %v4793_v50 }
 0x157   :  { %4177 = vmatprep.subr.bf16.mxu1 %v4794_v51 }
 0x158   :  { %2717 = vmatpush1.bf16.msra.mxu0 %v4751_v4 }
 0x159   :  { %2718 = vmatprep.subr.bf16.mxu0 %v4756_v6  ;;  %2472 = vmatmul.mubr.bf16.gmra.mrb[4].mxu1 %v5394_v63 }
 0x15a   :  { %4178 = vmatpush3.bf16.msra.mxu1 %v4795_v20 }
 0x15b   :  { %4179 = vmatprep.subr.bf16.mxu1 %v4796_v24 }
 0x15c   :  { %2719 = vmatpush1.bf16.msra.mxu0 %v4754_v8 }
 0x15d   :  { %2720 = vmatprep.subr.bf16.mxu0 %v4759_v10 }
 0x15e   :  { %4180 = vmatpush3.bf16.msra.mxu1 %v4797_v19 }
 0x15f   :  { %4181 = vmatprep.subr.bf16.mxu1 %v4798_v25 }
 0x160   :  { %2721 = vmatpush1.bf16.msra.mxu0 %v4757_v13 }
 0x161   :  { %2722 = vmatprep.subr.bf16.mxu0 %v4762_v16 }
 0x162   :  { %4182 = vmatpush3.bf16.msra.mxu1 %v4799_v53 }
 0x163   :  { %4183 = vmatprep.subr.bf16.mxu1 %v4800_v54 }
 0x164   :  { %2723 = vmatpush1.bf16.msra.mxu0 %v4760_v21 }
 0x165   :  { %2724 = vmatprep.subr.bf16.mxu0 %v4765_v17 }
 0x166   :  { %4184 = vmatpush3.bf16.msra.mxu1 %v4801_v26 }
 0x168   :  { %2725 = vmatpush1.bf16.msra.mxu0 %v4763_v56 }
 0x169   :  { %2726 = vmatprep.subr.bf16.mxu0 %v4768_v27 }
 0x16c   :  { %2727 = vmatpush1.bf16.msra.mxu0 %v4766_v33  ;;  %v772_v33 = vsub.s32 3, %v5143_v15 }
 0x16d   :  { %2728 = vmatprep.subr.bf16.mxu0 %v4771_v23 }
 0x16e   :  { %v773_v23 = vrot.slane %v756_v30, %v772_v33  ;;  %v4811_v33 = vld [vmem:[#allocation6 + $0x14] ss:$8 sps:$4 sm:$0xff]  }
 0x170   :  { %2729 = vmatpush1.bf16.msra.mxu0 %v4769_v34 }
 0x171   :  { %2730 = vmatprep.subr.bf16.mxu0 %v4774_v35 }
 0x174   :  { %2731 = vmatpush1.bf16.msra.mxu0 %v4772_v36 }
 0x175   :  { %2732 = vmatprep.subr.bf16.mxu0 %v4777_v37 }
 0x178   :  { %2733 = vmatpush1.bf16.msra.mxu0 %v4775_v38 }
 0x179   :  { %2734 = vmatprep.subr.bf16.mxu0 %v4780_v39 }
 0x17c   :  { %2735 = vmatpush1.bf16.msra.mxu0 %v4778_v40 }
 0x17d   :  { %2736 = vmatprep.subr.bf16.mxu0 %v4783_v41 }
 0x180   :  { %2737 = vmatpush1.bf16.msra.mxu0 %v4781_v42 }
 0x181   :  { %2738 = vmatprep.subr.bf16.mxu0 %v4786_v43 }
 0x184   :  { %2739 = vmatpush1.bf16.msra.mxu0 %v4784_v44 }
 0x185   :  { %2740 = vmatprep.subr.bf16.mxu0 %v4789_v45 }
 0x188   :  { %2741 = vmatpush1.bf16.msra.mxu0 %v4787_v46 }
 0x21e   :  { %v2251_v59 = vpop.f32.mrb[0].mxu0 }
 0x21f   :  { %v4229_v60 = vadd.f32 %v2251_v59, %v761_v32  ;;  %v2253_v61 = vpop.f32.mrb[1].mxu0  ;;  %v4802_v59 = vld [vmem:[%s5605_s5 + $0x70] sm:$0xff]  }
 0x220   :  { %v4230_v62 = vadd.f32 %v2253_v61, %v765_v52  ;;  %v2255_v63 = vpop.f32.mrb[2].mxu0  ;;  %4185 = vmatprep.subr.bf16.mxu1 %v4802_v59  ;;  %v4804_v61 = vld [vmem:[%s5605_s5 + $0x78] sm:$0xff]  }
 0x221   :  { %v4231_v0 = vadd.f32 %v2255_v63, %v761_v32  ;;  %v2257_v1 = vpop.f32.mrb[3].mxu0  ;;  %v2482_v3 = vmax.f32 %v4229_v60, 0.0  ;;  %v4803_v60 = vld [vmem:[%s5605_s5 + $0x30] sm:$0xff]   ;;  %v4808_v63 = vld [vmem:[#allocation6 + $0x4] ss:$8 sps:$4 sm:$0xff]  }
 0x222   :  { %v4232_v2 = vadd.f32 %v2257_v1, %v765_v52  ;;  %v2483_v5 = vmax.f32 %v4230_v62, 0.0  ;;  %4186 = vmatpush3.bf16.msra.mxu1 %v4803_v60  ;;  %v4805_v62 = vld [vmem:[%s5605_s5 + $0x38] sm:$0xff]   ;;  %v5007_v1 = vmov 0   ;;  %v4838_v60 = vld [vmem:[#allocation6 + $0xa4] ss:$8 sps:$4 sm:$0xff]  }
 0x223   :  { %v2486_v4 = vmax.f32 %v4231_v0, 0.0  ;;  %4187 = vmatprep.subr.bf16.mxu1 %v4804_v61  ;;  %v3623_v0 = vld [vmem:[%s5611_s11 + $0x8] sm:$0xff]  ;;  %4309 = vset.pattern.permute.xlu1 %v5007_v1  ;;  %v4833_v59 = vld [vmem:[#allocation6 + $0x90] ss:$8 sps:$4 sm:$0xff]  }
 0x224   :  { %v2487_v6 = vmax.f32 %v4232_v2, 0.0  ;;  %v2463_v34 = vpop.f32.mrb[0].mxu1  ;;  %4308 = vset.pattern.permute.xlu0 %v5007_v1  ;;  %3630 = vperm.xlu1 %4309, %v3623_v0   ;;  %v3624_v2 = vld [vmem:[%s5611_s11 + $0x10] sm:$0xff]  ;;  %v4836_v61 = vld [vmem:[#allocation6 + $0xa0] ss:$8 sps:$4 sm:$0xff]  }
 0x225   :  { %v2498_v7 = vpack.c.bf16 %v2486_v4, %v2482_v3  ;;  %v4237_v35 = vadd.f32 %v2463_v34, %v769_v58  ;;  %v2465_v36 = vpop.f32.mrb[1].mxu1  ;;  %v2538_v3 = vld [vmem:[%s5604_s4] sm:$0x3]  ;;  %v4844_v0 = vld [vmem:[#allocation6 + $0xc4] ss:$8 sps:$4 sm:$0xff]  }
 0x226   :  { %v2499_v8 = vpack.c.bf16 %v2487_v6, %v2483_v5  ;;  %v2261_v9 = vpop.f32.mrb[4].mxu0  ;;  %v4238_v37 = vadd.f32 %v2465_v36, %v773_v23  ;;  %v2467_v38 = vpop.f32.mrb[2].mxu1  ;;  %4188 = vmatpush3.bf16.msra.mxu1 %v4805_v62  ;;  %v2543_v4 = vrot.slane %v2538_v3, %v5437_v29  ;;  %v2547_v5 = vrot.slane %v2538_v3, %v5443_v31  ;;  %v4841_v62 = vld [vmem:[#allocation6 + $0xb4] ss:$8 sps:$4 sm:$0xff]   ;;  %v4842_v1 = vld [vmem:[#allocation6 + $0xc0] ss:$8 sps:$4 sm:$0xff]  }
 0x227   :  { %v4233_v10 = vadd.f32 %v2261_v9, %v761_v32  ;;  %v2263_v12 = vpop.f32.mrb[5].mxu0  ;;  %v2484_v39 = vmax.f32 %v4237_v35, 0.0  ;;  %v4239_v40 = vadd.f32 %v2467_v38, %v769_v58  ;;  %v2469_v41 = vpop.f32.mrb[3].mxu1  ;;  %3163 = vmatprep.subr.bf16.mxu1 %v4808_v63  ;;  %v4839_v63 = vld [vmem:[#allocation6 + $0xb0] ss:$8 sps:$4 sm:$0xff]  }
 0x228   :  { %v4234_v13 = vadd.f32 %v2263_v12, %v765_v52  ;;  %v2265_v14 = vpop.f32.mrb[6].mxu0  ;;  %2742 = vmatprep.mubr.bf16.mxu0 %v2499_v8  ;;  %v2485_v42 = vmax.f32 %v4238_v37, 0.0  ;;  %v4240_v43 = vadd.f32 %v2469_v41, %v773_v23  ;;  %3633 = vperm.xlu1 %4309, %v3624_v2   ;;  %v4809_v37 = vld [vmem:[#allocation6 + $0x10] ss:$8 sps:$4 sm:$0xff]   ;;  %v4847_v2 = vld [vmem:[#allocation6 + $0xd4] ss:$8 sps:$4 sm:$0xff]  }
 0x229   :  { %v4235_v16 = vadd.f32 %v2265_v14, %v761_v32  ;;  %v2267_v18 = vpop.f32.mrb[7].mxu0  ;;  %2743 = vmatmul.mubr.bf16.vlgmr.msra.gmra.mrb[8].mxu0 %v2498_v7  ;;  %v2490_v22 = vmax.f32 %v4233_v10, 0.0  ;;  %v2488_v44 = vmax.f32 %v4239_v40, 0.0  ;;  %v4814_v40 = vld [vmem:[#allocation6 + $0x24] ss:$8 sps:$4 sm:$0xff]  }
 0x22a   :  { %v4236_v21 = vadd.f32 %v2267_v18, %v765_v52  ;;  %v2491_v55 = vmax.f32 %v4234_v13, 0.0  ;;  %v2489_v45 = vmax.f32 %v4240_v43, 0.0  ;;  %v4845_v3 = vld [vmem:[#allocation6 + $0xd0] ss:$8 sps:$4 sm:$0xff]  }
 0x22b   :  { %v2494_v17 = vmax.f32 %v4235_v16, 0.0  ;;  %v5449_v46 = vpack.c.bf16 %v2488_v44, %v2484_v39 }
 0x22c   :  { %v2495_v56 = vmax.f32 %v4236_v21, 0.0  ;;  %v5451_v47 = vpack.c.bf16 %v2489_v45, %v2485_v42  ;;  %v2473_v48 = vpop.f32.mrb[4].mxu1  ;;  %v4812_v45 = vld [vmem:[#allocation6 + $0x20] ss:$8 sps:$4 sm:$0xff]  }
 0x22d   :  { %v2500_v57 = vpack.c.bf16 %v2494_v17, %v2490_v22  ;;  %v4241_v49 = vadd.f32 %v2473_v48, %v769_v58  ;;  %v2475_v50 = vpop.f32.mrb[5].mxu1  ;;  %v4817_v48 = vld [vmem:[#allocation6 + $0x34] ss:$8 sps:$4 sm:$0xff]  }
 0x22e   :  { %v2501_v27 = vpack.c.bf16 %v2495_v56, %v2491_v55  ;;  %v4242_v51 = vadd.f32 %v2475_v50, %v773_v23  ;;  %v2477_v20 = vpop.f32.mrb[6].mxu1  ;;  %v4820_v50 = vld [vmem:[#allocation6 + $0x44] ss:$8 sps:$4 sm:$0xff]  }
 0x22f   :  { %v2492_v24 = vmax.f32 %v4241_v49, 0.0  ;;  %v4243_v19 = vadd.f32 %v2477_v20, %v769_v58  ;;  %v2479_v25 = vpop.f32.mrb[7].mxu1  ;;  %v4815_v49 = vld [vmem:[#allocation6 + $0x30] ss:$8 sps:$4 sm:$0xff]   ;;  %v4823_v20 = vld [vmem:[#allocation6 + $0x54] ss:$8 sps:$4 sm:$0xff]  }
 0x230   :  { %2752 = vmatprep.mubr.bf16.mxu0 %v2501_v27  ;;  %v2493_v53 = vmax.f32 %v4242_v51, 0.0  ;;  %v4244_v54 = vadd.f32 %v2479_v25, %v773_v23  ;;  %v4818_v51 = vld [vmem:[#allocation6 + $0x40] ss:$8 sps:$4 sm:$0xff]  }
 0x231   :  { %2753 = vmatmul.mubr.bf16.gmra.mrb[12].mxu0 %v2500_v57  ;;  %v2496_v26 = vmax.f32 %v4243_v19, 0.0  ;;  %v4806_v57 = vld [vmem:[#allocation6] ss:$8 sps:$4 sm:$0xff]   ;;  %v4826_v19 = vld [vmem:[#allocation6 + $0x64] ss:$8 sps:$4 sm:$0xff]  }
 0x232   :  { %v2497_v30 = vmax.f32 %v4244_v54, 0.0  ;;  %v4824_v25 = vld [vmem:[#allocation6 + $0x60] ss:$8 sps:$4 sm:$0xff]   ;;  %v4827_v54 = vld [vmem:[#allocation6 + $0x70] ss:$8 sps:$4 sm:$0xff]  }
 0x233   :  { %v5453_v32 = vpack.c.bf16 %v2496_v26, %v2492_v24  ;;  %v4821_v24 = vld [vmem:[#allocation6 + $0x50] ss:$8 sps:$4 sm:$0xff]   ;;  %v4832_v26 = vld [vmem:[#allocation6 + $0x84] ss:$8 sps:$4 sm:$0xff]  }
 0x234   :  { %v5455_v52 = vpack.c.bf16 %v2497_v30, %v2493_v53  ;;  %v4829_v53 = vld [vmem:[#allocation6 + $0x74] ss:$8 sps:$4 sm:$0xff]  }
 0x235   :  { %v4835_v30 = vld [vmem:[#allocation6 + $0x94] ss:$8 sps:$4 sm:$0xff]  }
 0x2fc   :  { %v2744_v6 = vpop.f32.mrb[8].mxu0 }
 0x2fd   :  { %v2745_v7 = vadd.f32 %v2744_v6, %v2543_v4  ;;  %v2746_v8 = vpop.f32.mrb[9].mxu0  ;;  %v4853_v6 = vld [vmem:[#allocation6 + $0xf4] ss:$8 sps:$4 sm:$0xff]  }
 0x2fe   :  { %v2747_v9 = vadd.f32 %v2746_v8, %v2547_v5  ;;  %v2748_v10 = vpop.f32.mrb[10].mxu0  ;;  %v4854_v8 = vld [vmem:[#allocation7 + $0x40] sm:$0xff]  }
 0x2ff   :  { %v2749_v12 = vadd.f32 %v2748_v10, %v2543_v4  ;;  %v2750_v13 = vpop.f32.mrb[11].mxu0  ;;  %v2763_v16 = vmax.f32 %v2745_v7, 0.0  ;;  %v4851_v7 = vld [vmem:[#allocation6 + $0xf0] ss:$8 sps:$4 sm:$0xff]   ;;  %v4856_v10 = vld [vmem:[#allocation7 + $0x48] sm:$0xff]   ;;  %4201 = vmatprep.subr.bf16.mxu0 %v4854_v8 }
 0x300   :  { %v2751_v14 = vadd.f32 %v2750_v13, %v2547_v5  ;;  %v2764_v21 = vmax.f32 %v2747_v9, 0.0  ;;  %v4855_v9 = vld [vmem:[#allocation7] sm:$0xff]   ;;  %v4858_v13 = vld [vmem:[#allocation7 + $0x50] sm:$0xff]  }
 0x301   :  { %v2765_v18 = vmax.f32 %v2749_v12, 0.0  ;;  %4202 = vmatpush3.bf16.msra.mxu0 %v4855_v9  ;;  %v4857_v12 = vld [vmem:[#allocation7 + $0x8] sm:$0xff]  }
 0x302   :  { %v2766_v22 = vmax.f32 %v2751_v14, 0.0  ;;  %4203 = vmatprep.subr.bf16.mxu0 %v4856_v10  ;;  %v4859_v14 = vld [vmem:[#allocation7 + $0x10] sm:$0xff]  }
 0x303   :  { %v2771_v17 = vpack.c.bf16 %v2765_v18, %v2763_v16  ;;  %v4860_v16 = vld [vmem:[#allocation7 + $0x58] sm:$0xff]  }
 0x304   :  { %v2772_v55 = vpack.c.bf16 %v2766_v22, %v2764_v21  ;;  %v2754_v56 = vpop.f32.mrb[12].mxu0  ;;  %v4861_v18 = vld [vmem:[#allocation7 + $0x18] sm:$0xff]   ;;  %v4865_v21 = vld [vmem:[#allocation7 + $0x28] sm:$0xff]   ;;  %v4866_v22 = vld [vmem:[#allocation7 + $0x70] sm:$0xff]  }
 0x305   :  { %v2755_v27 = vadd.f32 %v2754_v56, %v2543_v4  ;;  %v2756_v28 = vpop.f32.mrb[13].mxu0  ;;  %4204 = vmatpush3.bf16.msra.mxu0 %v4857_v12  ;;  %v4869_v56 = vld [vmem:[#allocation7 + $0x38] sm:$0xff]  }
 0x306   :  { %v2757_v58 = vadd.f32 %v2756_v28, %v2547_v5  ;;  %v2758_v23 = vpop.f32.mrb[14].mxu0  ;;  %2942 = vmatprep.mubr.bf16.mxu1 %v2772_v55  ;;  %4205 = vmatprep.subr.bf16.mxu0 %v4858_v13  ;;  %v4868_v55 = vld [vmem:[#allocation7 + $0x78] sm:$0xff]   ;;  %v3415_v28 = vld [vmem:[%s5612_s12 + $0x3] sm:$0x1] }
 0x307   :  { %v2759_v34 = vadd.f32 %v2758_v23, %v2543_v4  ;;  %v2760_v35 = vpop.f32.mrb[15].mxu0  ;;  %2943 = vmatmul.mubr.bf16.vlgmr.msra.gmra.mrb[8].mxu1 %v2771_v17  ;;  %v2767_v38 = vmax.f32 %v2755_v27, 0.0  ;;  %v4850_v4 = vld [vmem:[#allocation6 + $0xe4] ss:$8 sps:$4 sm:$0xff]   ;;  %v4867_v17 = vld [vmem:[#allocation7 + $0x30] sm:$0xff]  }
 0x308   :  { %v2761_v36 = vadd.f32 %v2760_v35, %v2547_v5  ;;  %3164 = vmatpush1.bf16.msra.mxu1 %v4806_v57  ;;  %v2768_v41 = vmax.f32 %v2757_v58, 0.0  ;;  %v4848_v5 = vld [vmem:[#allocation6 + $0xe0] ss:$8 sps:$4 sm:$0xff]  }
 0x309   :  { %v2769_v39 = vmax.f32 %v2759_v34, 0.0  ;;  %3165 = vmatprep.subr.bf16.mxu1 %v4811_v33  ;;  %4206 = vmatpush3.bf16.msra.mxu0 %v4859_v14  ;;  %v3412_v57 = vld [vmem:[%s5612_s12] sm:$0x1]  ;;  %v3413_v27 = vld [vmem:[%s5612_s12 + $0x1] sm:$0x1]  ;;  %v3423_v34 = vunpack.c.0.s8 %v3415_v28  ;;  %v5008_v28 = vmov 0.0  }
 0x30a   :  { %v2770_v42 = vmax.f32 %v2761_v36, 0.0  ;;  %4207 = vmatprep.subr.bf16.mxu0 %v4860_v16  ;;  %v3414_v33 = vld [vmem:[%s5612_s12 + $0x2] sm:$0x1]  ;;  %v3420_v58 = vunpack.c.0.s8 %v3412_v57  ;;  %v3421_v23 = vunpack.c.0.s8 %v3413_v27  ;;  %v5545_v27 = vand.u32 127, %v171_v11 }
 0x30b   :  { %v2773_v43 = vpack.c.bf16 %v2769_v39, %v2767_v38  ;;  %v3422_v36 = vunpack.c.0.s8 %v3414_v33 }
 0x30c   :  { %v2774_v44 = vpack.c.bf16 %v2770_v42, %v2768_v41  ;;  %3166 = vmatpush1.bf16.msra.mxu1 %v4809_v37  ;;  %v4103_v37 = vld [vmem:[%s5606_s6] ss:$0 sm:$0xff]  ;;  %v3428_v39 = vcvt.s32.f32 %v3420_v58  ;;  %vm3739_vm12 = vcmp.eq.s32.totalorder %v5545_v27, 1  ;;  %vm3738_vm13 = vcmp.eq.s32.totalorder %v5545_v27, 0 }
 0x30d   :  { %3167 = vmatprep.subr.bf16.mxu1 %v4814_v40  ;;  %4208 = vmatpush3.bf16.msra.mxu0 %v4861_v18  ;;  %v3429_v40 = vcvt.s32.f32 %v3421_v23  ;;  %v2991_v23 = vld [vmem:[%s5608_s8] sm:$0x3] }
 0x30e   :  { %2950 = vmatprep.mubr.bf16.mxu1 %v2774_v44  ;;  %v3417_v44 = vld [vmem:[%s5612_s12 + $0x5] sm:$0x1]  ;;  %vm3436_vm0 = vcmp.ne.f32.partialorder %v3428_v39, 0.0 }
 0x30f   :  { %2951 = vmatmul.mubr.bf16.gmra.mrb[12].mxu1 %v2773_v43  ;;  %v3416_v43 = vld [vmem:[%s5612_s12 + $0x4] sm:$0x1]  ;;  %vm3437_vm1 = vcmp.ne.f32.partialorder %v3429_v40, 0.0 }
 0x310   :  { %3168 = vmatpush1.bf16.msra.mxu1 %v4812_v45  ;;  %3195 = vmatprep.mubr.bf16.mxu1 %v5451_v47  ;;  %v4830_v47 = vld [vmem:[#allocation6 + $0x80] ss:$8 sps:$4 sm:$0xff]  }
 0x311   :  { %3169 = vmatprep.subr.bf16.mxu1 %v4817_v48  ;;  %v3431_v48 = vcvt.s32.f32 %v3423_v34  ;;  %v2996_v34 = vrot.slane %v2991_v23, %v5437_v29 }
 0x313   :  { %vm3439_vm2 = vcmp.ne.f32.partialorder %v3431_v48, 0.0 }
 0x314   :  { %3170 = vmatpush1.bf16.msra.mxu1 %v4815_v49 }
 0x315   :  { %3171 = vmatprep.subr.bf16.mxu1 %v4820_v50 }
 0x318   :  { %3172 = vmatpush1.bf16.msra.mxu1 %v4818_v51  ;;  %v3430_v51 = vcvt.s32.f32 %v3422_v36 }
 0x319   :  { %3173 = vmatprep.subr.bf16.mxu1 %v4823_v20  ;;  %v3419_v20 = vld [vmem:[%s5612_s12 + $0x7] sm:$0x1] }
 0x31a   :  { %vm3438_vm3 = vcmp.ne.f32.partialorder %v3430_v51, 0.0 }
 0x31c   :  { %3174 = vmatpush1.bf16.msra.mxu1 %v4821_v24  ;;  %v3424_v24 = vunpack.c.0.s8 %v3416_v43 }
 0x31d   :  { %3175 = vmatprep.subr.bf16.mxu1 %v4826_v19  ;;  %v3425_v19 = vunpack.c.0.s8 %v3417_v44 }
 0x320   :  { %3176 = vmatpush1.bf16.msra.mxu1 %v4824_v25 }
 0x321   :  { %3177 = vmatprep.subr.bf16.mxu1 %v4829_v53 }
 0x324   :  { %3178 = vmatpush1.bf16.msra.mxu1 %v4827_v54  ;;  %v3418_v54 = vld [vmem:[%s5612_s12 + $0x6] sm:$0x1] }
 0x325   :  { %3179 = vmatprep.subr.bf16.mxu1 %v4832_v26  ;;  %v3427_v26 = vunpack.c.0.s8 %v3419_v20 }
 0x328   :  { %3180 = vmatpush1.bf16.msra.mxu1 %v4830_v47 }
 0x329   :  { %3181 = vmatprep.subr.bf16.mxu1 %v4835_v30 }
 0x32c   :  { %3182 = vmatpush1.bf16.msra.mxu1 %v4833_v59 }
 0x32d   :  { %3183 = vmatprep.subr.bf16.mxu1 %v4838_v60 }
 0x330   :  { %3184 = vmatpush1.bf16.msra.mxu1 %v4836_v61 }
 0x331   :  { %3185 = vmatprep.subr.bf16.mxu1 %v4841_v62  ;;  %v3432_v62 = vcvt.s32.f32 %v3424_v24 }
 0x333   :  { %vm3440_vm4 = vcmp.ne.f32.partialorder %v3432_v62, 0.0 }
 0x334   :  { %3186 = vmatpush1.bf16.msra.mxu1 %v4839_v63  ;;  %v3426_v63 = vunpack.c.0.s8 %v3418_v54 }
 0x335   :  { %3187 = vmatprep.subr.bf16.mxu1 %v4844_v0 }
 0x336   :  { %v3434_v10 = vcvt.s32.f32 %v3426_v63 }
 0x338   :  { %3188 = vmatpush1.bf16.msra.mxu1 %v4842_v1  ;;  %v3433_v1 = vcvt.s32.f32 %v3425_v19  ;;  %vm3442_vm7 = vcmp.ne.f32.partialorder %v3434_v10, 0.0 }
 0x339   :  { %3189 = vmatprep.subr.bf16.mxu1 %v4847_v2 }
 0x33a   :  { %vm3441_vm5 = vcmp.ne.f32.partialorder %v3433_v1, 0.0 }
 0x33c   :  { %3190 = vmatpush1.bf16.msra.mxu1 %v4845_v3 }
 0x33d   :  { %3191 = vmatprep.subr.bf16.mxu1 %v4850_v4 }
 0x340   :  { %3192 = vmatpush1.bf16.msra.mxu1 %v4848_v5 }
 0x341   :  { %3193 = vmatprep.subr.bf16.mxu1 %v4853_v6  ;;  %v3435_v6 = vcvt.s32.f32 %v3427_v26 }
 0x343   :  { %vm3443_vm6 = vcmp.ne.f32.partialorder %v3435_v6, 0.0 }
 0x344   :  { %3194 = vmatpush1.bf16.msra.mxu1 %v4851_v7 }
 0x347   :  { %3196 = vmatmul.mubr.bf16.vlgmr.msra.gmra.mrb[16].mxu1 %v5449_v46  ;;  %v4862_v46 = vld [vmem:[#allocation7 + $0x60] sm:$0xff]  }
 0x348   :  { %3205 = vmatprep.mubr.bf16.mxu1 %v5455_v52  ;;  %v4863_v52 = vld [vmem:[#allocation7 + $0x20] sm:$0xff]   ;;  %4209 = vmatprep.subr.bf16.mxu0 %v4862_v46 }
 0x349   :  { %4210 = vmatpush3.bf16.msra.mxu0 %v4863_v52 }
 0x34f   :  { %3206 = vmatmul.mubr.bf16.gmra.mrb[20].mxu1 %v5453_v32  ;;  %v4864_v32 = vld [vmem:[#allocation7 + $0x68] sm:$0xff]  }
 0x350   :  { %4211 = vmatprep.subr.bf16.mxu0 %v4864_v32 }
 0x351   :  { %4212 = vmatpush3.bf16.msra.mxu0 %v4865_v21 }
 0x352   :  { %4213 = vmatprep.subr.bf16.mxu0 %v4866_v22 }
 0x355   :  { %4214 = vmatpush3.bf16.msra.mxu0 %v4867_v17  ;;  %v3622_v17 = vld [vmem:[%s5611_s11] sm:$0xff] }
 0x356   :  { %4215 = vmatprep.subr.bf16.mxu0 %v4868_v55  ;;  %v3625_v55 = vld [vmem:[%s5611_s11 + $0x18] sm:$0xff] }
 0x359   :  { %4216 = vmatpush3.bf16.msra.mxu0 %v4869_v56  ;;  %v5542_v56 = vpop.permute.xlu1 %3630 }
 0x35a   :  { %vm3639_vm9 = vcmp.eq.s32.totalorder %v5545_v27, %v5542_v56 }
 0x35d   :  { %v3634_v57 = vpop.permute.xlu1 %3633 }
 0x35e   :  { %vm3640_vm8 = vcmp.eq.s32.totalorder %v5545_v27, %v3634_v57 }
 0x35f   :  { %v4171_v33 = vsel %vm3640_vm8, 1.0, %v5008_v28 }
 0x360   :  { %v3656_v58 = vcombine.high %v4171_v33, %v4171_v33 }
 0x3da   :  { %v4189_v35 = vpop.f32.mrb[8].mxu1 }
 0x3db   :  { %v4190_v38 = vpop.f32.mrb[9].mxu1 }
 0x3dc   :  { %v4191_v41 = vadd.f32 %v4190_v38, %v4189_v35  ;;  %v4192_v42 = vpop.f32.mrb[10].mxu1  ;;  %v3000_v35 = vrot.slane %v2991_v23, %v5443_v31 }
 0x3dd   :  { %v4193_v45 = vpop.f32.mrb[11].mxu1 }
 0x3de   :  { %v2945_v49 = vadd.f32 %v4191_v41, %v4103_v37  ;;  %v4194_v50 = vadd.f32 %v4193_v45, %v4192_v42 }
 0x3e0   :  { %v3448_v25 = vcombine.high %v2945_v49, %v2945_v49  ;;  %v2948_v53 = vadd.f32 %v4194_v50, %v4103_v37  ;;  %v5511_v59 = vsel %vm3436_vm0, %v2945_v49, -1e+08 }
 0x3e2   :  { %v3449_v47 = vcombine.high %v2948_v53, %v2948_v53  ;;  %v4195_v30 = vpop.f32.mrb[12].mxu1  ;;  %v5513_v60 = vsel %vm3437_vm1, %v3448_v25, -1e+08  ;;  %v5520_v7 = vsel %vm3438_vm3, %v2948_v53, -1e+08 }
 0x3e3   :  { %v4196_v61 = vpop.f32.mrb[13].mxu1  ;;  %v3472_v0 = vcombine.low %v5511_v59, %v5513_v60 }
 0x3e4   :  { %v4197_v2 = vadd.f32 %v4196_v61, %v4195_v30  ;;  %v4198_v3 = vpop.f32.mrb[14].mxu1  ;;  %v5517_v4 = vsel %vm3439_vm2, %v3449_v47, -1e+08 }
 0x3e5   :  { %v4199_v5 = vpop.f32.mrb[15].mxu1  ;;  %3480 = vmax.xlane.f32.xlu0 %v3472_v0  ;;  %v3473_v12 = vcombine.low %v5520_v7, %v5517_v4 }
 0x3e6   :  { %v2953_v8 = vadd.f32 %v4197_v2, %v4103_v37  ;;  %v4200_v9 = vadd.f32 %v4199_v5, %v4198_v3  ;;  %v5009_v2 = vmov 839922192   ;;  %v5010_v5 = vmov 1985246804  }
 0x3e7   :  { %v3493_v3 = vunpack.c.l.s4 %v5009_v2  ;;  %v3500_v6 = vunpack.c.l.s4 %v5010_v5 }
 0x3e8   :  { %v3450_v13 = vcombine.high %v2953_v8, %v2953_v8  ;;  %v2956_v14 = vadd.f32 %v4200_v9, %v4103_v37  ;;  %v5524_v16 = vsel %vm3440_vm4, %v2953_v8, -1e+08 }
 0x3e9   :  { %3482 = vmax.xlane.f32.xlu0 %v3473_v12  ;;  %v3666_v37 = vmul.f32 %v4171_v33, %v5524_v16  ;;  %v3494_v8 = vunpack.c.0.s8 %v3493_v3  ;;  %v3501_v9 = vunpack.c.0.s8 %v3500_v6 }
 0x3ea   :  { %v3451_v18 = vcombine.high %v2956_v14, %v2956_v14  ;;  %v5526_v46 = vsel %vm3441_vm5, %v3450_v13, -1e+08  ;;  %v5532_v21 = vsel %vm3442_vm7, %v2956_v14, -1e+08 }
 0x3eb   :  { %v3474_v52 = vcombine.low %v5524_v16, %v5526_v46  ;;  %v3667_v36 = vmul.f32 %v3656_v58, %v5526_v46  ;;  %v3497_v10 = vsub.s32 %v3494_v8, %v5143_v15  ;;  %v3504_v13 = vsub.s32 %v3501_v9, %v5143_v15 }
 0x3ec   :  { %v5530_v32 = vsel %vm3443_vm6, %v3451_v18, -1e+08 }
 0x3ed   :  { %3484 = vmax.xlane.f32.xlu1 %v3474_v52  ;;  %v3475_v22 = vcombine.low %v5532_v21, %v5530_v32  ;;  %v3680_v42 = vcombine.low %v3666_v37, %v3667_v36 }
 0x3f1   :  { %3486 = vmax.xlane.f32.xlu1 %v3475_v22 }
 0x3ff   :  { %3627 = vperm.xlu0 %4308, %v3622_v17  }
 0x402   :  { %3636 = vperm.xlu1 %4309, %v3625_v55  }
 0x41a   :  { %v3197_v11 = vpop.f32.mrb[16].mxu1 }
 0x41b   :  { %v3198_v38 = vadd.f32 %v3197_v11, %v2996_v34  ;;  %v3199_v39 = vpop.f32.mrb[17].mxu1  ;;  %v4170_v11 = vsel %vm3639_vm9, 1.0, %v5008_v28 }
 0x41c   :  { %v3200_v40 = vadd.f32 %v3199_v39, %v3000_v35  ;;  %v3201_v41 = vpop.f32.mrb[18].mxu1 }
 0x41d   :  { %v3202_v43 = vadd.f32 %v3201_v41, %v2996_v34  ;;  %v3203_v44 = vpop.f32.mrb[19].mxu1  ;;  %v3216_v48 = vmax.f32 %v3198_v38, 0.0 }
 0x41e   :  { %v3204_v45 = vadd.f32 %v3203_v44, %v3000_v35  ;;  %3690 = vadd.xlane.f32.xlu0 %v3680_v42  ;;  %v3217_v50 = vmax.f32 %v3200_v40, 0.0 }
 0x41f   :  { %v3218_v49 = vmax.f32 %v3202_v43, 0.0 }
 0x420   :  { %v3219_v29 = vmax.f32 %v3204_v45, 0.0  ;;  %v3655_v45 = vcombine.high %v4170_v11, %v4170_v11 }
 0x421   :  { %v3224_v51 = vpack.c.bf16 %v3218_v49, %v3216_v48 }
 0x422   :  { %v3225_v31 = vpack.c.bf16 %v3219_v29, %v3217_v50  ;;  %v3207_v20 = vpop.f32.mrb[20].mxu1 }
 0x423   :  { %v3208_v24 = vadd.f32 %v3207_v20, %v2996_v34  ;;  %v3209_v19 = vpop.f32.mrb[21].mxu1 }
 0x424   :  { %v3210_v25 = vadd.f32 %v3209_v19, %v3000_v35  ;;  %v3211_v53 = vpop.f32.mrb[22].mxu1  ;;  %3395 = vmatprep.mubr.bf16.mxu0 %v3225_v31 }
 0x425   :  { %v3212_v54 = vadd.f32 %v3211_v53, %v2996_v34  ;;  %v3213_v26 = vpop.f32.mrb[23].mxu1  ;;  %3396 = vmatmul.mubr.bf16.vlgmr.msra.gmra.mrb[16].mxu0 %v3224_v51  ;;  %v3220_v30 = vmax.f32 %v3208_v24, 0.0 }
 0x426   :  { %v3214_v47 = vadd.f32 %v3213_v26, %v3000_v35  ;;  %v3221_v62 = vmax.f32 %v3210_v25, 0.0 }
 0x427   :  { %v3222_v61 = vmax.f32 %v3212_v54, 0.0  ;;  %v3665_v54 = vmul.f32 %v3655_v45, %v5517_v4 }
 0x428   :  { %v3223_v63 = vmax.f32 %v3214_v47, 0.0 }
 0x429   :  { %v3226_v0 = vpack.c.bf16 %v3222_v61, %v3220_v30  ;;  %v3664_v30 = vmul.f32 %v4170_v11, %v5520_v7 }
 0x42a   :  { %v3227_v1 = vpack.c.bf16 %v3223_v63, %v3221_v62 }
 0x42c   :  { %3403 = vmatprep.mubr.bf16.mxu0 %v3227_v1  ;;  %v3679_v1 = vcombine.low %v3664_v30, %v3665_v54 }
 0x42d   :  { %3404 = vmatmul.mubr.bf16.gmra.mrb[20].mxu0 %v3226_v0 }
 0x472   :  { %v5557_v12 = vpop.xlane.xlu0 %3480 }
 0x473   :  { %v3498_v14 = vrot.slane %v5557_v12, %v3497_v10  ;;  %v3505_v52 = vrot.slane %v5557_v12, %v3504_v13 }
 0x475   :  { %v3556_v33 = vsub.f32 %v5511_v59, %v3498_v14  ;;  %v3557_v23 = vsub.f32 %v5513_v60, %v3505_v52 }
 0x476   :  { %v3483_v18 = vpop.xlane.xlu0 %3482 }
 0x477   :  { %v3512_v22 = vrot.slane %v3483_v18, %v3497_v10  ;;  %v3519_v17 = vrot.slane %v3483_v18, %v3504_v13  ;;  %v3564_v15 = vmul.f32 1.442695, %v3556_v33  ;;  %v3566_v38 = vmul.f32 1.442695, %v3557_v23 }
 0x479   :  { %v3558_v55 = vsub.f32 %v5520_v7, %v3512_v22  ;;  %v3559_v57 = vsub.f32 %v5517_v4, %v3519_v17 }
 0x47a   :  { %v3485_v58 = vpop.xlane.xlu1 %3484 }
 0x47b   :  { %v3568_v34 = vmul.f32 1.442695, %v3558_v55  ;;  %v3570_v35 = vmul.f32 1.442695, %v3559_v57  ;;  %v3526_v41 = vrot.slane %v3485_v58, %v3497_v10  ;;  %v3533_v42 = vrot.slane %v3485_v58, %v3504_v13 }
 0x47d   :  { %4870 = vpow2.f32 %v3568_v34  ;;  %v3560_v51 = vsub.f32 %v5524_v16, %v3526_v41  ;;  %v3561_v19 = vsub.f32 %v5526_v46, %v3533_v42 }
 0x47e   :  { %4872 = vpow2.f32 %v3570_v35  ;;  %v3487_v36 = vpop.xlane.xlu1 %3486  ;;  %v3628_v37 = vpop.permute.xlu0 %3627 }
 0x47f   :  { %v3540_v39 = vrot.slane %v3487_v36, %v3497_v10  ;;  %v3547_v40 = vrot.slane %v3487_v36, %v3504_v13  ;;  %vm3638_vm10 = vcmp.eq.s32.totalorder %v5545_v27, %v3628_v37  ;;  %4874 = vpow2.f32 %v3564_v15 }
 0x480   :  { %v4169_v56 = vsel %vm3638_vm10, 1.0, %v5008_v28  ;;  %4876 = vpow2.f32 %v3566_v38  ;;  %v3572_v61 = vmul.f32 1.442695, %v3560_v51  ;;  %v3574_v62 = vmul.f32 1.442695, %v3561_v19 }
 0x481   :  { %v3562_v43 = vsub.f32 %v5532_v21, %v3540_v39  ;;  %v3563_v44 = vsub.f32 %v5530_v32, %v3547_v40  ;;  %v3654_v48 = vcombine.high %v4169_v56, %v4169_v56  ;;  %v3662_v31 = vmul.f32 %v4169_v56, %v5511_v59 }
 0x482   :  { %v3637_v49 = vpop.permute.xlu1 %3636 }
 0x483   :  { %v3576_v50 = vmul.f32 1.442695, %v3562_v43  ;;  %v3578_v29 = vmul.f32 1.442695, %v3563_v44  ;;  %vm3641_vm11 = vcmp.eq.s32.totalorder %v5545_v27, %v3637_v49  ;;  %v3663_v24 = vmul.f32 %v3654_v48, %v5513_v60 }
 0x484   :  { %v4172_v20 = vsel %vm3641_vm11, 1.0, %v5008_v28 }
 0x485   :  { %4878 = vpow2.f32 %v3576_v50  ;;  %v3657_v25 = vcombine.high %v4172_v20, %v4172_v20  ;;  %v3678_v53 = vcombine.low %v3662_v31, %v3663_v24  ;;  %v3668_v5 = vmul.f32 %v4172_v20, %v5532_v21 }
 0x486   :  { %4880 = vpow2.f32 %v3578_v29 }
 0x487   :  { %v4871_v26 = vpop.eup %4870  ;;  %3686 = vadd.xlane.f32.xlu1 %v3678_v53  ;;  %v3669_v2 = vmul.f32 %v3657_v25, %v5530_v32  ;;  %4882 = vpow2.f32 %v3572_v61 }
 0x488   :  { %v4873_v47 = vpop.eup %4872  ;;  %v3700_v28 = vmul.f32 %v4871_v26, %v5520_v7  ;;  %4884 = vpow2.f32 %v3574_v62 }
 0x489   :  { %v3589_v63 = vcombine.low %v4871_v26, %v4873_v47  ;;  %v3701_v0 = vmul.f32 %v4873_v47, %v5517_v4  ;;  %v4875_v3 = vpop.eup %4874  ;;  %v3681_v9 = vcombine.low %v3668_v5, %v3669_v2 }
 0x48a   :  { %v4877_v6 = vpop.eup %4876  ;;  %v3698_v18 = vmul.f32 %v4875_v3, %v5511_v59 }
 0x48b   :  { %3598 = vadd.xlane.f32.xlu0 %v3589_v63  ;;  %3688 = vadd.xlane.f32.xlu1 %v3679_v1  ;;  %v3715_v8 = vcombine.low %v3700_v28, %v3701_v0  ;;  %v3588_v14 = vcombine.low %v4875_v3, %v4877_v6  ;;  %v3699_v52 = vmul.f32 %v4877_v6, %v5513_v60  ;;  %v4152_v60 = vld [vmem:[%s5610_s10] ss:$0 sm:$0xff] }
 0x48d   :  { %v3714_v55 = vcombine.low %v3698_v18, %v3699_v52 }
 0x48f   :  { %v4879_v10 = vpop.eup %4878  ;;  %3724 = vadd.xlane.f32.xlu0 %v3715_v8  ;;  %3692 = vadd.xlane.f32.xlu1 %v3681_v9 }
 0x490   :  { %v4881_v13 = vpop.eup %4880  ;;  %v3704_v7 = vmul.f32 %v4879_v10, %v5532_v21 }
 0x491   :  { %v3705_v4 = vmul.f32 %v4881_v13, %v5530_v32  ;;  %v4883_v17 = vpop.eup %4882  ;;  %v3591_v58 = vcombine.low %v4879_v10, %v4881_v13 }
 0x492   :  { %v4885_v57 = vpop.eup %4884  ;;  %v3702_v23 = vmul.f32 %v4883_v17, %v5524_v16 }
 0x493   :  { %v3717_v22 = vcombine.low %v3704_v7, %v3705_v4  ;;  %3596 = vadd.xlane.f32.xlu1 %v3588_v14  ;;  %v3590_v33 = vcombine.low %v4883_v17, %v4885_v57  ;;  %v3703_v21 = vmul.f32 %v4885_v57, %v5526_v46 }
 0x495   :  { %3728 = vadd.xlane.f32.xlu0 %v3717_v22  ;;  %v3716_v32 = vcombine.low %v3702_v23, %v3703_v21 }
 0x497   :  { %3722 = vadd.xlane.f32.xlu1 %v3714_v55 }
 0x49b   :  { %3600 = vadd.xlane.f32.xlu1 %v3590_v33 }
 0x49f   :  { %3602 = vadd.xlane.f32.xlu1 %v3591_v58 }
 0x4a3   :  { %3726 = vadd.xlane.f32.xlu1 %v3716_v32 }
 0x4ab   :  { %v3691_v50 = vpop.xlane.xlu0 %3690 }
 0x4f8   :  { %v4217_v59 = vpop.f32.mrb[16].mxu0 }
 0x4f9   :  { %v4218_v34 = vpop.f32.mrb[17].mxu0 }
 0x4fa   :  { %v4219_v35 = vadd.f32 %v4218_v34, %v4217_v59  ;;  %v4220_v15 = vpop.f32.mrb[18].mxu0 }
 0x4fb   :  { %v4221_v36 = vpop.f32.mrb[19].mxu0 }
 0x4fc   :  { %v3398_v37 = vadd.f32 %v4219_v35, %v4152_v60  ;;  %v4222_v11 = vadd.f32 %v4221_v36, %v4220_v15 }
 0x4fe   :  { %v3401_v38 = vadd.f32 %v4222_v11, %v4152_v60  ;;  %3742 = vperm.xlu0 %4308, %v3398_v37  }
 0x500   :  { %v4223_v39 = vpop.f32.mrb[20].mxu0  ;;  %3747 = vperm.xlu1 %4309, %v3401_v38  }
 0x501   :  { %v4224_v16 = vpop.f32.mrb[21].mxu0 }
 0x502   :  { %v4225_v46 = vadd.f32 %v4224_v16, %v4223_v39  ;;  %v4226_v40 = vpop.f32.mrb[22].mxu0 }
 0x503   :  { %v4227_v41 = vpop.f32.mrb[23].mxu0 }
 0x504   :  { %v3406_v42 = vadd.f32 %v4225_v46, %v4152_v60  ;;  %v4228_v43 = vadd.f32 %v4227_v41, %v4226_v40 }
 0x506   :  { %v3409_v44 = vadd.f32 %v4228_v43, %v4152_v60  ;;  %3752 = vperm.xlu1 %4309, %v3406_v42  }
 0x508   :  { %3757 = vperm.xlu0 %4308, %v3409_v44  }
 0x514   :  { %v3687_v56 = vpop.xlane.xlu1 %3686 }
 0x518   :  { %v3689_v45 = vpop.xlane.xlu1 %3688  ;;  %v3599_v51 = vpop.xlane.xlu0 %3598 }
 0x51c   :  { %v3693_v48 = vpop.xlane.xlu1 %3692  ;;  %v3725_v53 = vpop.xlane.xlu0 %3724 }
 0x520   :  { %v3597_v49 = vpop.xlane.xlu1 %3596 }
 0x521   :  { %4886 = vlog2.f32 %v3597_v49 }
 0x522   :  { %4888 = vlog2.f32 %v3599_v51  ;;  %v3729_v61 = vpop.xlane.xlu0 %3728 }
 0x523   :  { %4890 = vrcp.f32 %v3597_v49 }
 0x524   :  { %v3723_v29 = vpop.xlane.xlu1 %3722  ;;  %4892 = vrcp.f32 %v3599_v51 }
 0x528   :  { %v3601_v31 = vpop.xlane.xlu1 %3600 }
 0x529   :  { %4894 = vlog2.f32 %v3601_v31 }
 0x52b   :  { %v4887_v24 = vpop.eup %4886 }
 0x52c   :  { %v3603_v20 = vpop.xlane.xlu1 %3602  ;;  %v4889_v19 = vpop.eup %4888  ;;  %v3609_v25 = vmul.f32 0.6931472, %v4887_v24 }
 0x52d   :  { %4896 = vlog2.f32 %v3603_v20  ;;  %v4891_v54 = vpop.eup %4890 }
 0x52e   :  { %4898 = vrcp.f32 %v3601_v31  ;;  %v4893_v26 = vpop.eup %4892  ;;  %v3616_v47 = vadd.f32 %v3609_v25, %v5557_v12  ;;  %v3730_v62 = vmul.f32 %v4891_v54, %v3723_v29 }
 0x52f   :  { %4900 = vrcp.f32 %v3603_v20 }
 0x530   :  { %v3727_v28 = vpop.xlane.xlu1 %3726  ;;  %v3734_v0 = vsub.f32 %v3616_v47, %v3730_v62  ;;  %v3694_v1 = vsub.f32 %v3687_v56, %v3616_v47 }
 0x533   :  { %v4895_v30 = vpop.eup %4894 }
 0x537   :  { %v4897_v63 = vpop.eup %4896 }
 0x538   :  { %v4899_v5 = vpop.eup %4898 }
 0x539   :  { %v4901_v9 = vpop.eup %4900 }
 0x57d   :  { %v3743_v2 = vpop.permute.xlu0 %3742 }
 0x57e   :  { %v3760_v3 = vsel %vm3739_vm12, %v3743_v2, %v3734_v0 }
 0x57f   :  { %v3764_v6 = vsel %vm3738_vm13, %v3694_v1, %v3760_v3  ;;  %v3748_v8 = vpop.permute.xlu1 %3747 }
 0x580   :  { %3769 = vst.msk [vmem:[#allocation9] sm:$0xff] %vm3768_vm14, %v3764_v6 }
 0x585   :  { %v3753_v12 = vpop.permute.xlu1 %3752 }
 0x587   :  { %v3790_v10 = vld [vmem:[#allocation9] sm:$0x3]  ;;  %v3758_v13 = vpop.permute.xlu0 %3757 }
 0x588   :  { %3791 = vst [vmem:[%s5613_s13] sm:$0x3] %v3790_v10 }
 0x589   :  { %3808 = vsyncpa [#allocation3], 1 }
 0x58a   :  { %3809 = vsyncpa [#allocation5], 1 }
 0x58b   :  { %3810 = vsyncpa [#allocation8], 1 }

</bundles_post_ra>
